<compile_context>
chip_gen: v5e
topology: v5e:2x2
jax: 0.10.0
libtpu: 0.0.40
codegen_flags: <defaults>
</compile_context>

<pallas_src>
import jax
import jax.numpy as jnp
from jax.experimental import pallas as pl
from jax.experimental.pallas import tpu as pltpu


def _bottleneck_kernel(x_ref, xh_ref, w1_ref, b1_ref, w2_ref, b2_ref,
                       w3_ref, b3_ref, o_ref):
    j = pl.program_id(1)
    n_tiles = pl.num_programs(1)

    lrelu = lambda v: jnp.maximum(v, 0.2 * v)            # LeakyReLU(0.2), f32

    x = x_ref[0]                                         # (Cin, tL) f32, NCL-native block
    xh = xh_ref[0, 0]                                    # (Cin, 2) f32: [:,0]=col before tile, [:,1]=col after
    x_b = x.astype(jnp.bfloat16)

    w1 = w1_ref[...]                                     # (P, Cin) bf16, BN1 scale folded

    # ---- conv1 (1x1) + BN1 + LeakyReLU:  (P,Cin)@(Cin,tL) ----
    h = lrelu(jnp.dot(w1, x_b, preferred_element_type=jnp.float32) + b1_ref[...])          # (P, tL) f32
    # conv1 of the two halo columns (tiny dot; kept separate so the main dot stays lane-aligned)
    hh = lrelu(jnp.dot(w1, xh.astype(jnp.bfloat16),
                       preferred_element_type=jnp.float32) + b1_ref[...])                  # (P, 2) f32

    # conv2 zero-pads its *input* (h), so halo columns outside the true sequence must be exactly 0.
    left_valid = (j > 0).astype(h.dtype)
    right_valid = (j < n_tiles - 1).astype(h.dtype)
    h_left = hh[:, 0:1] * left_valid                     # h[:, l-1] for the tile's first column
    h_right = hh[:, 1:2] * right_valid                   # h[:, l+1] for the tile's last column

    tl = h.shape[1]
    lane = jax.lax.broadcasted_iota(jnp.int32, h.shape, 1)
    h_prev = jnp.where(lane == 0, h_left, pltpu.roll(h, 1, axis=1))        # h[:, l-1]
    h_next = jnp.where(lane == tl - 1, h_right, pltpu.roll(h, tl - 1, axis=1))  # h[:, l+1]

    # ---- conv2 (k=3, pad=1) + BN2 + LeakyReLU: three accumulating (P,P)@(P,tL) dots ----
    acc = jnp.dot(w2_ref[0], h_prev.astype(jnp.bfloat16), preferred_element_type=jnp.float32)
    acc = acc + jnp.dot(w2_ref[1], h.astype(jnp.bfloat16), preferred_element_type=jnp.float32)
    acc = acc + jnp.dot(w2_ref[2], h_next.astype(jnp.bfloat16), preferred_element_type=jnp.float32)
    h2 = lrelu(acc + b2_ref[...])                                           # (P, tL) f32

    # ---- conv3 (1x1 expansion) + BN3, residual add (f32 identity), LeakyReLU ----
    h3 = jnp.dot(w3_ref[...], h2.astype(jnp.bfloat16),
                 preferred_element_type=jnp.float32) + b3_ref[...]          # (Cout, tL) f32
    o_ref[0] = lrelu(h3 + x)


def _vmem_budget_bytes():
    """~75% of physical VMEM (≈48 MiB on v7x's 64 MiB, ≈96 MiB on v5e/v6e's 128 MiB)."""
    cap = 128 * 1024 * 1024
    try:
        cap = int(getattr(pltpu.get_tpu_info(), "vmem_capacity_bytes", cap))
    except Exception:
        pass
    return max(16 * 1024 * 1024, (cap * 3) // 4)


def _pick_tile(L, Cin, P, Cout, budget, max_tile=None):
    """Largest L-tile (multiple of 128, dividing L, or the full L) that fits the VMEM budget."""
    # tL-independent bytes: bf16 weights + f32 biases + slack
    fixed = 2 * (P * Cin + 3 * P * P + Cout * P) + 4 * (2 * P + Cout) + (2 << 20)
    # per-L-column bytes: double-buffered f32 x/out blocks + live f32/bf16 intermediates (rough)
    per_col = 8 * (Cin + Cout) + 4 * (4 * P + 2 * Cout) + 2 * (Cin + 4 * P)
    max_cols = max(128, (budget - fixed) // per_col)
    if max_tile is not None:
        max_cols = min(max_cols, max_tile)
    max_cols = min(max_cols, 4096)                      # per-step overhead amortized long before this
    if L <= max_cols:
        return L
    t = (max_cols // 128) * 128
    while t >= 128:
        if L % t == 0:
            return t
        t -= 128
    # TODO(synk): no 128-multiple divisor of L fits the budget; a masked tail tile (pl.cdiv grid)
    #             would be better than falling back to one huge block.
    return L


def _build_pallas_call(N, L, T, tL, Cin, P, Cout, vmem_limit, flops, bytes_accessed,
                       single_buffer_weights):
    def const_spec(shape):
        zeros = (0,) * len(shape)
        idx = lambda n, j: zeros
        if single_buffer_weights:
            # grid-invariant weights: no need for a second (double-buffer) copy in VMEM
            return pl.BlockSpec(shape, idx, pipeline_mode=pl.Buffered(1))
        return pl.BlockSpec(shape, idx)

    grid_spec = pltpu.PrefetchScalarGridSpec(
        num_scalar_prefetch=0,
        grid=(N, T),
        in_specs=[
            pl.BlockSpec((1, Cin, tL), lambda n, j: (n, 0, j)),      # x tile (NCL)
            pl.BlockSpec((1, 1, Cin, 2), lambda n, j: (n, j, 0, 0)),  # halo columns
            const_spec((P, Cin)),                                     # w1 (BN1 folded, bf16)
            const_spec((P, 1)),                                       # b1 (f32)
            const_spec((3, P, P)),                                    # w2 taps (BN2 folded, bf16)
            const_spec((P, 1)),                                       # b2
            const_spec((Cout, P)),                                    # w3 (BN3 folded, bf16)
            const_spec((Cout, 1)),                                    # b3
        ],
        out_specs=pl.BlockSpec((1, Cout, tL), lambda n, j: (n, 0, j)),
    )
    return pl.pallas_call(
        _bottleneck_kernel,
        out_shape=jax.ShapeDtypeStruct((N, Cout, L), jnp.float32),
        grid_spec=grid_spec,
        compiler_params=pltpu.CompilerParams(
            dimension_semantics=("parallel", "parallel"),
            vmem_limit_bytes=int(vmem_limit)),
        cost_estimate=pl.CostEstimate(flops=flops, transcendentals=0,
                                      bytes_accessed=bytes_accessed),
    )


def bottleneck_forward(x_ncl, params, *, max_tile=None):
    """x_ncl: (N, C_in, L) float32 in PyTorch NCL layout. Returns (N, C_out, L) float32."""
    w1, (s1, b1), w2, (s2, b2), w3, (s3, b3) = params
    N, Cin, L = x_ncl.shape
    P = w1.shape[0]
    Cout = w3.shape[0]
    assert Cout == Cin, "stride=1 / downsample=None requires inplanes == planes*4"

    budget = _vmem_budget_bytes()
    tL = _pick_tile(L, Cin, P, Cout, budget, max_tile)
    T = L // tL

    x = x_ncl.astype(jnp.float32)                                       # NCL, consumed directly

    # 1-column halo per L-tile for conv2 (only N*T*Cin*2 elements: negligible HBM traffic).
    x_t = x.reshape(N, Cin, T, tL)
    zcol = jnp.zeros((N, Cin, 1), jnp.float32)
    left = jnp.concatenate([zcol, x_t[:, :, :-1, tL - 1]], axis=2)      # (N, Cin, T)
    right = jnp.concatenate([x_t[:, :, 1:, 0], zcol], axis=2)           # (N, Cin, T)
    xh = jnp.transpose(jnp.stack([left, right], axis=-1), (0, 2, 1, 3))  # (N, T, Cin, 2)

    # Fold BN scales into conv output channels; bf16 weights for the MXU, f32 biases.
    w1f = (w1 * s1[:, None]).astype(jnp.bfloat16)                                  # (P, Cin)
    w2f = jnp.transpose(w2 * s2[:, None, None], (2, 0, 1)).astype(jnp.bfloat16)    # (3, P, P)
    w3f = (w3 * s3[:, None]).astype(jnp.bfloat16)                                  # (Cout, P)
    b1f = b1.reshape(P, 1).astype(jnp.float32)
    b2f = b2.reshape(P, 1).astype(jnp.float32)
    b3f = b3.reshape(Cout, 1).astype(jnp.float32)

    flops = 2 * N * L * (Cin * P + 3 * P * P + P * Cout)
    bytes_accessed = (4 * N * L * (Cin + Cout) + 4 * N * T * Cin * 2
                      + 2 * (Cin * P + 3 * P * P + P * Cout) + 4 * (2 * P + Cout))

    args = (x, xh, w1f, b1f, w2f, b2f, w3f, b3f)
    last_err = None
    for single_buf in (True, False):   # fall back if pl.Buffered(1) unsupported on this JAX version
        try:
            call = _build_pallas_call(N, L, T, tL, Cin, P, Cout, budget, flops,
                                      bytes_accessed, single_buffer_weights=single_buf)
            return call(*args)
        except Exception as e:  # noqa: BLE001 - retry once without single-buffered weights
            last_err = e
    raise last_err


# ----- pure-JAX f32 reference (same math, no Pallas) for a correctness check -----
def _reference(x_ncl, params):
    w1, (s1, b1), w2, (s2, b2), w3, (s3, b3) = params
    x = x_ncl.astype(jnp.float32)                                        # (N, Cin, L)
    h = jnp.einsum("pc,ncl->npl", w1, x) * s1[:, None] + b1[:, None]
    h = jnp.maximum(h, 0.2 * h)
    hp = jnp.pad(h, ((0, 0), (0, 0), (1, 1)))
    h2 = (jnp.einsum("qp,npl->nql", w2[:, :, 0], hp[:, :, :-2])
          + jnp.einsum("qp,npl->nql", w2[:, :, 1], hp[:, :, 1:-1])
          + jnp.einsum("qp,npl->nql", w2[:, :, 2], hp[:, :, 2:]))
    h2 = h2 * s2[:, None] + b2[:, None]
    h2 = jnp.maximum(h2, 0.2 * h2)
    h3 = jnp.einsum("qp,npl->nql", w3, h2) * s3[:, None] + b3[:, None]
    out = h3 + x
    return jnp.maximum(out, 0.2 * out)


def _make_params(key, inplanes, planes, expansion=4, eps=1e-5):
    ks = jax.random.split(key, 12)
    cexp = planes * expansion

    def bn(kg, kb, km, kv, c):
        gamma = jax.random.uniform(kg, (c,), jnp.float32, 0.5, 1.5)
        beta = 0.1 * jax.random.normal(kb, (c,), jnp.float32)
        rmean = 0.1 * jax.random.normal(km, (c,), jnp.float32)
        rvar = jax.random.uniform(kv, (c,), jnp.float32, 0.5, 1.5)
        scale = gamma / jnp.sqrt(rvar + eps)
        bias = beta - rmean * scale
        return scale, bias

    w1 = 0.1 * jax.random.normal(ks[0], (planes, inplanes), jnp.float32)    # conv1 (1x1)
    w2 = 0.1 * jax.random.normal(ks[1], (planes, planes, 3), jnp.float32)   # conv2 (k=3)
    w3 = 0.1 * jax.random.normal(ks[2], (cexp, planes), jnp.float32)        # conv3 (1x1)
    bn1 = bn(ks[3], ks[4], ks[5], ks[6], planes)
    bn2 = bn(ks[7], ks[8], ks[9], ks[10], planes)
    bn3 = bn(ks[11], ks[3], ks[7], ks[0], cexp)
    return w1, bn1, w2, bn2, w3, bn3


if __name__ == "__main__":
    key = jax.random.PRNGKey(0)
    planes = 8
    inplanes = planes * 4          # 32, so the residual add is valid (stride=1, no downsample)
    N, L = 2, 256

    kx, kp = jax.random.split(key)
    x = jax.random.normal(kx, (N, inplanes, L), jnp.float32)   # PyTorch NCL layout
    params = _make_params(kp, inplanes, planes)

    ref = _reference(x, params)

    # Single-tile path (tL = L, auto-sized from VMEM).
    out_full = jax.block_until_ready(bottleneck_forward(x, params))
    # Tiled path exercising the conv2 halo across L-tiles (tL = 128 -> 2 tiles per batch element).
    out_tiled = jax.block_until_ready(bottleneck_forward(x, params, max_tile=128))

    assert out_full.shape == (N, inplanes, L)
    # bf16 matmul datapath vs f32 reference: loose tolerance.
    assert jnp.allclose(out_full, ref, atol=5e-2, rtol=5e-2), "mismatch vs f32 reference (single tile)"
    assert jnp.allclose(out_tiled, ref, atol=5e-2, rtol=5e-2), "mismatch vs f32 reference (tiled + halo)"
    # Tiled vs single-tile use identical bf16 math; only the halo path differs -> must agree tightly.
    assert jnp.allclose(out_full, out_tiled, atol=1e-4, rtol=1e-4), "tiling/halo inconsistency"

    print("KERNEL_OK")
</pallas_src>

<mosaic_0001>
module attributes {stable_mosaic.version = 11 : i64} {
  func.func @_bottleneck_kernel(%arg0: i32, %arg1: i32, %arg2: memref<1x32x256xf32, #tpu.memory_space<vmem>>, %arg3: memref<1x1x32x2xf32, #tpu.memory_space<vmem>>, %arg4: memref<8x32xbf16, #tpu.memory_space<vmem>>, %arg5: memref<8x1xf32, #tpu.memory_space<vmem>>, %arg6: memref<3x8x8xbf16, #tpu.memory_space<vmem>>, %arg7: memref<8x1xf32, #tpu.memory_space<vmem>>, %arg8: memref<32x8xbf16, #tpu.memory_space<vmem>>, %arg9: memref<32x1xf32, #tpu.memory_space<vmem>>, %arg10: memref<1x32x256xf32, #tpu.memory_space<vmem>>) attributes {dimension_semantics = [#tpu.dimension_semantics<parallel>, #tpu.dimension_semantics<parallel>], iteration_bounds = array<i64: 2, 1>, scalar_prefetch = 0 : i64, scratch_operands = 0 : i64, tpu.core_type = #tpu.core_type<tc>, window_params = [{transform_indices = @transform_0, window_bounds = array<i64: 1, 32, 256>}, {transform_indices = @transform_1, window_bounds = array<i64: 1, 1, 32, 2>}, {pipeline_mode = #tpu.pipeline_mode<synchronous>, transform_indices = @transform_2, window_bounds = array<i64: 8, 32>}, {pipeline_mode = #tpu.pipeline_mode<synchronous>, transform_indices = @transform_3, window_bounds = array<i64: 8, 1>}, {pipeline_mode = #tpu.pipeline_mode<synchronous>, transform_indices = @transform_4, window_bounds = array<i64: 3, 8, 8>}, {pipeline_mode = #tpu.pipeline_mode<synchronous>, transform_indices = @transform_5, window_bounds = array<i64: 8, 1>}, {pipeline_mode = #tpu.pipeline_mode<synchronous>, transform_indices = @transform_6, window_bounds = array<i64: 32, 8>}, {pipeline_mode = #tpu.pipeline_mode<synchronous>, transform_indices = @transform_7, window_bounds = array<i64: 32, 1>}, {transform_indices = @transform_8, window_bounds = array<i64: 1, 32, 256>}]} {
    %c0 = arith.constant 0 : index
    %c0_0 = arith.constant 0 : index
    %c0_1 = arith.constant 0 : index
    %0 = vector.load %arg2[%c0, %c0_0, %c0_1] : memref<1x32x256xf32, #tpu.memory_space<vmem>>, vector<1x32x256xf32>
    %1 = vector.shape_cast %0 : vector<1x32x256xf32> to vector<32x256xf32>
    %c0_2 = arith.constant 0 : index
    %c0_3 = arith.constant 0 : index
    %c0_4 = arith.constant 0 : index
    %c0_5 = arith.constant 0 : index
    %2 = vector.load %arg3[%c0_2, %c0_3, %c0_4, %c0_5] : memref<1x1x32x2xf32, #tpu.memory_space<vmem>>, vector<1x1x32x2xf32>
    %3 = vector.shape_cast %2 : vector<1x1x32x2xf32> to vector<32x2xf32>
    %4 = arith.truncf %1 : vector<32x256xf32> to vector<32x256xbf16>
    %c0_6 = arith.constant 0 : index
    %c0_7 = arith.constant 0 : index
    %5 = vector.load %arg4[%c0_6, %c0_7] : memref<8x32xbf16, #tpu.memory_space<vmem>>, vector<8x32xbf16>
    %cst = arith.constant dense<0.000000e+00> : vector<8x256xf32>
    %6 = tpu.matmul %5, %4, %cst {dimension_numbers = #tpu.dot_dimension_numbers<[1], [0], [0], [1], [0, 0, 1, 1], [], []>} : vector<8x32xbf16>, vector<32x256xbf16>, vector<8x256xf32> -> vector<8x256xf32>
    %c0_8 = arith.constant 0 : index
    %c0_9 = arith.constant 0 : index
    %7 = vector.load %arg5[%c0_8, %c0_9] : memref<8x1xf32, #tpu.memory_space<vmem>>, vector<8x1xf32>
    %8 = vector.broadcast %7 : vector<8x1xf32> to vector<8x256xf32>
    %9 = arith.addf %6, %8 : vector<8x256xf32>
    %cst_10 = arith.constant 2.000000e-01 : f32
    %10 = vector.broadcast %cst_10 : f32 to vector<8x256xf32>
    %11 = arith.mulf %10, %9 : vector<8x256xf32>
    %12 = arith.maximumf %9, %11 : vector<8x256xf32>
    %13 = arith.truncf %3 : vector<32x2xf32> to vector<32x2xbf16>
    %cst_11 = arith.constant dense<0.000000e+00> : vector<8x2xf32>
    %14 = tpu.matmul %5, %13, %cst_11 {dimension_numbers = #tpu.dot_dimension_numbers<[1], [0], [0], [1], [0, 0, 1, 1], [], []>} : vector<8x32xbf16>, vector<32x2xbf16>, vector<8x2xf32> -> vector<8x2xf32>
    %c0_12 = arith.constant 0 : index
    %c0_13 = arith.constant 0 : index
    %15 = vector.load %arg5[%c0_12, %c0_13] : memref<8x1xf32, #tpu.memory_space<vmem>>, vector<8x1xf32>
    %16 = vector.broadcast %15 : vector<8x1xf32> to vector<8x2xf32>
    %17 = arith.addf %14, %16 : vector<8x2xf32>
    %cst_14 = arith.constant 2.000000e-01 : f32
    %18 = vector.broadcast %cst_14 : f32 to vector<8x2xf32>
    %19 = arith.mulf %18, %17 : vector<8x2xf32>
    %20 = arith.maximumf %17, %19 : vector<8x2xf32>
    %c0_i32 = arith.constant 0 : i32
    %21 = arith.cmpi sgt, %arg1, %c0_i32 : i32
    %22 = arith.extui %21 : i1 to i32
    %23 = arith.sitofp %22 : i32 to f32
    %c0_i32_15 = arith.constant 0 : i32
    %24 = arith.cmpi slt, %arg1, %c0_i32_15 : i32
    %25 = arith.extui %24 : i1 to i32
    %26 = arith.sitofp %25 : i32 to f32
    %27 = vector.extract_strided_slice %20 {offsets = [0, 0], sizes = [8, 1], strides = [1, 1]} : vector<8x2xf32> to vector<8x1xf32>
    %28 = vector.broadcast %23 : f32 to vector<8x1xf32>
    %29 = arith.mulf %27, %28 : vector<8x1xf32>
    %30 = vector.extract_strided_slice %20 {offsets = [0, 1], sizes = [8, 1], strides = [1, 1]} : vector<8x2xf32> to vector<8x1xf32>
    %31 = vector.broadcast %26 : f32 to vector<8x1xf32>
    %32 = arith.mulf %30, %31 : vector<8x1xf32>
    %33 = tpu.iota {dimensions = array<i32: 1>} : vector<8x256xi32>
    %c0_i32_16 = arith.constant 0 : i32
    %34 = vector.broadcast %c0_i32_16 : i32 to vector<8x256xi32>
    %35 = arith.cmpi eq, %33, %34 : vector<8x256xi32>
    %c1_i32 = arith.constant 1 : i32
    %36 = tpu.dynamic_rotate %12 by %c1_i32 dim 1 : vector<8x256xf32>, i32 -> vector<8x256xf32>
    %37 = vector.shape_cast %29 : vector<8x1xf32> to vector<8x1xf32>
    %38 = vector.broadcast %37 : vector<8x1xf32> to vector<8x256xf32>
    %39 = arith.select %35, %38, %36 : vector<8x256xi1>, vector<8x256xf32>
    %c255_i32 = arith.constant 255 : i32
    %40 = vector.broadcast %c255_i32 : i32 to vector<8x256xi32>
    %41 = arith.cmpi eq, %33, %40 : vector<8x256xi32>
    %c255_i32_17 = arith.constant 255 : i32
    %42 = tpu.dynamic_rotate %12 by %c255_i32_17 dim 1 : vector<8x256xf32>, i32 -> vector<8x256xf32>
    %43 = vector.shape_cast %32 : vector<8x1xf32> to vector<8x1xf32>
    %44 = vector.broadcast %43 : vector<8x1xf32> to vector<8x256xf32>
    %45 = arith.select %41, %44, %42 : vector<8x256xi1>, vector<8x256xf32>
    %c0_18 = arith.constant 0 : index
    %c0_19 = arith.constant 0 : index
    %c0_20 = arith.constant 0 : index
    %46 = vector.load %arg6[%c0_18, %c0_19, %c0_20] : memref<3x8x8xbf16, #tpu.memory_space<vmem>>, vector<1x8x8xbf16>
    %47 = vector.shape_cast %46 : vector<1x8x8xbf16> to vector<8x8xbf16>
    %48 = arith.truncf %39 : vector<8x256xf32> to vector<8x256xbf16>
    %cst_21 = arith.constant dense<0.000000e+00> : vector<8x256xf32>
    %49 = tpu.matmul %47, %48, %cst_21 {dimension_numbers = #tpu.dot_dimension_numbers<[1], [0], [0], [1], [0, 0, 1, 1], [], []>} : vector<8x8xbf16>, vector<8x256xbf16>, vector<8x256xf32> -> vector<8x256xf32>
    %c1 = arith.constant 1 : index
    %c0_22 = arith.constant 0 : index
    %c0_23 = arith.constant 0 : index
    %50 = vector.load %arg6[%c1, %c0_22, %c0_23] : memref<3x8x8xbf16, #tpu.memory_space<vmem>>, vector<1x8x8xbf16>
    %51 = vector.shape_cast %50 : vector<1x8x8xbf16> to vector<8x8xbf16>
    %52 = arith.truncf %12 : vector<8x256xf32> to vector<8x256xbf16>
    %cst_24 = arith.constant dense<0.000000e+00> : vector<8x256xf32>
    %53 = tpu.matmul %51, %52, %cst_24 {dimension_numbers = #tpu.dot_dimension_numbers<[1], [0], [0], [1], [0, 0, 1, 1], [], []>} : vector<8x8xbf16>, vector<8x256xbf16>, vector<8x256xf32> -> vector<8x256xf32>
    %54 = arith.addf %49, %53 : vector<8x256xf32>
    %c2 = arith.constant 2 : index
    %c0_25 = arith.constant 0 : index
    %c0_26 = arith.constant 0 : index
    %55 = vector.load %arg6[%c2, %c0_25, %c0_26] : memref<3x8x8xbf16, #tpu.memory_space<vmem>>, vector<1x8x8xbf16>
    %56 = vector.shape_cast %55 : vector<1x8x8xbf16> to vector<8x8xbf16>
    %57 = arith.truncf %45 : vector<8x256xf32> to vector<8x256xbf16>
    %cst_27 = arith.constant dense<0.000000e+00> : vector<8x256xf32>
    %58 = tpu.matmul %56, %57, %cst_27 {dimension_numbers = #tpu.dot_dimension_numbers<[1], [0], [0], [1], [0, 0, 1, 1], [], []>} : vector<8x8xbf16>, vector<8x256xbf16>, vector<8x256xf32> -> vector<8x256xf32>
    %59 = arith.addf %54, %58 : vector<8x256xf32>
    %c0_28 = arith.constant 0 : index
    %c0_29 = arith.constant 0 : index
    %60 = vector.load %arg7[%c0_28, %c0_29] : memref<8x1xf32, #tpu.memory_space<vmem>>, vector<8x1xf32>
    %61 = vector.broadcast %60 : vector<8x1xf32> to vector<8x256xf32>
    %62 = arith.addf %59, %61 : vector<8x256xf32>
    %cst_30 = arith.constant 2.000000e-01 : f32
    %63 = vector.broadcast %cst_30 : f32 to vector<8x256xf32>
    %64 = arith.mulf %63, %62 : vector<8x256xf32>
    %65 = arith.maximumf %62, %64 : vector<8x256xf32>
    %c0_31 = arith.constant 0 : index
    %c0_32 = arith.constant 0 : index
    %66 = vector.load %arg8[%c0_31, %c0_32] : memref<32x8xbf16, #tpu.memory_space<vmem>>, vector<32x8xbf16>
    %67 = arith.truncf %65 : vector<8x256xf32> to vector<8x256xbf16>
    %cst_33 = arith.constant dense<0.000000e+00> : vector<32x256xf32>
    %68 = tpu.matmul %66, %67, %cst_33 {dimension_numbers = #tpu.dot_dimension_numbers<[1], [0], [0], [1], [0, 0, 1, 1], [], []>} : vector<32x8xbf16>, vector<8x256xbf16>, vector<32x256xf32> -> vector<32x256xf32>
    %c0_34 = arith.constant 0 : index
    %c0_35 = arith.constant 0 : index
    %69 = vector.load %arg9[%c0_34, %c0_35] : memref<32x1xf32, #tpu.memory_space<vmem>>, vector<32x1xf32>
    %70 = vector.broadcast %69 : vector<32x1xf32> to vector<32x256xf32>
    %71 = arith.addf %68, %70 : vector<32x256xf32>
    %72 = arith.addf %71, %1 : vector<32x256xf32>
    %cst_36 = arith.constant 2.000000e-01 : f32
    %73 = vector.broadcast %cst_36 : f32 to vector<32x256xf32>
    %74 = arith.mulf %73, %72 : vector<32x256xf32>
    %75 = arith.maximumf %72, %74 : vector<32x256xf32>
    %c0_37 = arith.constant 0 : index
    %c0_38 = arith.constant 0 : index
    %c0_39 = arith.constant 0 : index
    %76 = vector.load %arg10[%c0_37, %c0_38, %c0_39] : memref<1x32x256xf32, #tpu.memory_space<vmem>>, vector<1x32x256xf32>
    %77 = vector.shape_cast %76 : vector<1x32x256xf32> to vector<32x256xf32>
    %78 = vector.shape_cast %75 : vector<32x256xf32> to vector<1x32x256xf32>
    tpu.vector_store %arg10[%c0_37, %c0_38, %c0_39], %78 {strides = array<i32>} : memref<1x32x256xf32, #tpu.memory_space<vmem>>, vector<1x32x256xf32>,
    return
  }
  func.func @transform_0(%arg0: i32, %arg1: i32) -> (i32, i32, i32) {
    %c0_i32 = arith.constant 0 : i32
    %c0_i32_0 = arith.constant 0 : i32
    return %arg0, %c0_i32, %arg1 : i32, i32, i32
  }
  func.func @transform_1(%arg0: i32, %arg1: i32) -> (i32, i32, i32, i32) {
    %c0_i32 = arith.constant 0 : i32
    %c0_i32_0 = arith.constant 0 : i32
    %c0_i32_1 = arith.constant 0 : i32
    return %arg0, %arg1, %c0_i32, %c0_i32_0 : i32, i32, i32, i32
  }
  func.func @transform_2(%arg0: i32, %arg1: i32) -> (i32, i32) {
    %c0_i32 = arith.constant 0 : i32
    %c0_i32_0 = arith.constant 0 : i32
    %c0_i32_1 = arith.constant 0 : i32
    return %c0_i32, %c0_i32_0 : i32, i32
  }
  func.func @transform_3(%arg0: i32, %arg1: i32) -> (i32, i32) {
    %c0_i32 = arith.constant 0 : i32
    %c0_i32_0 = arith.constant 0 : i32
    %c0_i32_1 = arith.constant 0 : i32
    return %c0_i32, %c0_i32_0 : i32, i32
  }
  func.func @transform_4(%arg0: i32, %arg1: i32) -> (i32, i32, i32) {
    %c0_i32 = arith.constant 0 : i32
    %c0_i32_0 = arith.constant 0 : i32
    %c0_i32_1 = arith.constant 0 : i32
    %c0_i32_2 = arith.constant 0 : i32
    return %c0_i32, %c0_i32_0, %c0_i32_1 : i32, i32, i32
  }
  func.func @transform_5(%arg0: i32, %arg1: i32) -> (i32, i32) {
    %c0_i32 = arith.constant 0 : i32
    %c0_i32_0 = arith.constant 0 : i32
    %c0_i32_1 = arith.constant 0 : i32
    return %c0_i32, %c0_i32_0 : i32, i32
  }
  func.func @transform_6(%arg0: i32, %arg1: i32) -> (i32, i32) {
    %c0_i32 = arith.constant 0 : i32
    %c0_i32_0 = arith.constant 0 : i32
    %c0_i32_1 = arith.constant 0 : i32
    return %c0_i32, %c0_i32_0 : i32, i32
  }
  func.func @transform_7(%arg0: i32, %arg1: i32) -> (i32, i32) {
    %c0_i32 = arith.constant 0 : i32
    %c0_i32_0 = arith.constant 0 : i32
    %c0_i32_1 = arith.constant 0 : i32
    return %c0_i32, %c0_i32_0 : i32, i32
  }
  func.func @transform_8(%arg0: i32, %arg1: i32) -> (i32, i32, i32) {
    %c0_i32 = arith.constant 0 : i32
    %c0_i32_0 = arith.constant 0 : i32
    return %arg0, %c0_i32, %arg1 : i32, i32, i32
  }
}

module attributes {stable_mosaic.version = 11 : i64} {
  func.func @_bottleneck_kernel(%arg0: i32, %arg1: i32, %arg2: memref<1x32x256xf32, #tpu.memory_space<vmem>>, %arg3: memref<1x1x32x2xf32, #tpu.memory_space<vmem>>, %arg4: memref<8x32xbf16, #tpu.memory_space<vmem>>, %arg5: memref<8x1xf32, #tpu.memory_space<vmem>>, %arg6: memref<3x8x8xbf16, #tpu.memory_space<vmem>>, %arg7: memref<8x1xf32, #tpu.memory_space<vmem>>, %arg8: memref<32x8xbf16, #tpu.memory_space<vmem>>, %arg9: memref<32x1xf32, #tpu.memory_space<vmem>>, %arg10: memref<1x32x256xf32, #tpu.memory_space<vmem>>) attributes {dimension_semantics = [#tpu.dimension_semantics<parallel>, #tpu.dimension_semantics<parallel>], iteration_bounds = array<i64: 2, 1>, scalar_prefetch = 0 : i64, scratch_operands = 0 : i64, tpu.core_type = #tpu.core_type<tc>, window_params = [{transform_indices = @transform_0, window_bounds = array<i64: 1, 32, 256>}, {transform_indices = @transform_1, window_bounds = array<i64: 1, 1, 32, 2>}, {pipeline_mode = #tpu.pipeline_mode<synchronous>, transform_indices = @transform_2, window_bounds = array<i64: 8, 32>}, {pipeline_mode = #tpu.pipeline_mode<synchronous>, transform_indices = @transform_3, window_bounds = array<i64: 8, 1>}, {pipeline_mode = #tpu.pipeline_mode<synchronous>, transform_indices = @transform_4, window_bounds = array<i64: 3, 8, 8>}, {pipeline_mode = #tpu.pipeline_mode<synchronous>, transform_indices = @transform_5, window_bounds = array<i64: 8, 1>}, {pipeline_mode = #tpu.pipeline_mode<synchronous>, transform_indices = @transform_6, window_bounds = array<i64: 32, 8>}, {pipeline_mode = #tpu.pipeline_mode<synchronous>, transform_indices = @transform_7, window_bounds = array<i64: 32, 1>}, {transform_indices = @transform_8, window_bounds = array<i64: 1, 32, 256>}]} {
    %c0 = arith.constant 0 : index
    %c0_0 = arith.constant 0 : index
    %c0_1 = arith.constant 0 : index
    %0 = vector.load %arg2[%c0, %c0_0, %c0_1] : memref<1x32x256xf32, #tpu.memory_space<vmem>>, vector<1x32x256xf32>
    %1 = vector.shape_cast %0 : vector<1x32x256xf32> to vector<32x256xf32>
    %c0_2 = arith.constant 0 : index
    %c0_3 = arith.constant 0 : index
    %c0_4 = arith.constant 0 : index
    %c0_5 = arith.constant 0 : index
    %2 = vector.load %arg3[%c0_2, %c0_3, %c0_4, %c0_5] : memref<1x1x32x2xf32, #tpu.memory_space<vmem>>, vector<1x1x32x2xf32>
    %3 = vector.shape_cast %2 : vector<1x1x32x2xf32> to vector<32x2xf32>
    %4 = arith.truncf %1 : vector<32x256xf32> to vector<32x256xbf16>
    %c0_6 = arith.constant 0 : index
    %c0_7 = arith.constant 0 : index
    %5 = vector.load %arg4[%c0_6, %c0_7] : memref<8x32xbf16, #tpu.memory_space<vmem>>, vector<8x32xbf16>
    %cst = arith.constant dense<0.000000e+00> : vector<8x256xf32>
    %6 = tpu.matmul %5, %4, %cst {dimension_numbers = #tpu.dot_dimension_numbers<[1], [0], [0], [1], [0, 0, 1, 1], [], []>} : vector<8x32xbf16>, vector<32x256xbf16>, vector<8x256xf32> -> vector<8x256xf32>
    %c0_8 = arith.constant 0 : index
    %c0_9 = arith.constant 0 : index
    %7 = vector.load %arg5[%c0_8, %c0_9] : memref<8x1xf32, #tpu.memory_space<vmem>>, vector<8x1xf32>
    %8 = vector.broadcast %7 : vector<8x1xf32> to vector<8x256xf32>
    %9 = arith.addf %6, %8 : vector<8x256xf32>
    %cst_10 = arith.constant 2.000000e-01 : f32
    %10 = vector.broadcast %cst_10 : f32 to vector<8x256xf32>
    %11 = arith.mulf %10, %9 : vector<8x256xf32>
    %12 = arith.maximumf %9, %11 : vector<8x256xf32>
    %13 = arith.truncf %3 : vector<32x2xf32> to vector<32x2xbf16>
    %cst_11 = arith.constant dense<0.000000e+00> : vector<8x2xf32>
    %14 = tpu.matmul %5, %13, %cst_11 {dimension_numbers = #tpu.dot_dimension_numbers<[1], [0], [0], [1], [0, 0, 1, 1], [], []>} : vector<8x32xbf16>, vector<32x2xbf16>, vector<8x2xf32> -> vector<8x2xf32>
    %c0_12 = arith.constant 0 : index
    %c0_13 = arith.constant 0 : index
    %15 = vector.load %arg5[%c0_12, %c0_13] : memref<8x1xf32, #tpu.memory_space<vmem>>, vector<8x1xf32>
    %16 = vector.broadcast %15 : vector<8x1xf32> to vector<8x2xf32>
    %17 = arith.addf %14, %16 : vector<8x2xf32>
    %cst_14 = arith.constant 2.000000e-01 : f32
    %18 = vector.broadcast %cst_14 : f32 to vector<8x2xf32>
    %19 = arith.mulf %18, %17 : vector<8x2xf32>
    %20 = arith.maximumf %17, %19 : vector<8x2xf32>
    %c0_i32 = arith.constant 0 : i32
    %21 = arith.cmpi sgt, %arg1, %c0_i32 : i32
    %22 = arith.extui %21 : i1 to i32
    %23 = arith.sitofp %22 : i32 to f32
    %c0_i32_15 = arith.constant 0 : i32
    %24 = arith.cmpi slt, %arg1, %c0_i32_15 : i32
    %25 = arith.extui %24 : i1 to i32
    %26 = arith.sitofp %25 : i32 to f32
    %27 = vector.extract_strided_slice %20 {offsets = [0, 0], sizes = [8, 1], strides = [1, 1]} : vector<8x2xf32> to vector<8x1xf32>
    %28 = vector.broadcast %23 : f32 to vector<8x1xf32>
    %29 = arith.mulf %27, %28 : vector<8x1xf32>
    %30 = vector.extract_strided_slice %20 {offsets = [0, 1], sizes = [8, 1], strides = [1, 1]} : vector<8x2xf32> to vector<8x1xf32>
    %31 = vector.broadcast %26 : f32 to vector<8x1xf32>
    %32 = arith.mulf %30, %31 : vector<8x1xf32>
    %33 = tpu.iota {dimensions = array<i32: 1>} : vector<8x256xi32>
    %c0_i32_16 = arith.constant 0 : i32
    %34 = vector.broadcast %c0_i32_16 : i32 to vector<8x256xi32>
    %35 = arith.cmpi eq, %33, %34 : vector<8x256xi32>
    %c1_i32 = arith.constant 1 : i32
    %36 = tpu.dynamic_rotate %12 by %c1_i32 dim 1 : vector<8x256xf32>, i32 -> vector<8x256xf32>
    %37 = vector.shape_cast %29 : vector<8x1xf32> to vector<8x1xf32>
    %38 = vector.broadcast %37 : vector<8x1xf32> to vector<8x256xf32>
    %39 = arith.select %35, %38, %36 : vector<8x256xi1>, vector<8x256xf32>
    %c255_i32 = arith.constant 255 : i32
    %40 = vector.broadcast %c255_i32 : i32 to vector<8x256xi32>
    %41 = arith.cmpi eq, %33, %40 : vector<8x256xi32>
    %c255_i32_17 = arith.constant 255 : i32
    %42 = tpu.dynamic_rotate %12 by %c255_i32_17 dim 1 : vector<8x256xf32>, i32 -> vector<8x256xf32>
    %43 = vector.shape_cast %32 : vector<8x1xf32> to vector<8x1xf32>
    %44 = vector.broadcast %43 : vector<8x1xf32> to vector<8x256xf32>
    %45 = arith.select %41, %44, %42 : vector<8x256xi1>, vector<8x256xf32>
    %c0_18 = arith.constant 0 : index
    %c0_19 = arith.constant 0 : index
    %c0_20 = arith.constant 0 : index
    %46 = vector.load %arg6[%c0_18, %c0_19, %c0_20] : memref<3x8x8xbf16, #tpu.memory_space<vmem>>, vector<1x8x8xbf16>
    %47 = vector.shape_cast %46 : vector<1x8x8xbf16> to vector<8x8xbf16>
    %48 = arith.truncf %39 : vector<8x256xf32> to vector<8x256xbf16>
    %cst_21 = arith.constant dense<0.000000e+00> : vector<8x256xf32>
    %49 = tpu.matmul %47, %48, %cst_21 {dimension_numbers = #tpu.dot_dimension_numbers<[1], [0], [0], [1], [0, 0, 1, 1], [], []>} : vector<8x8xbf16>, vector<8x256xbf16>, vector<8x256xf32> -> vector<8x256xf32>
    %c1 = arith.constant 1 : index
    %c0_22 = arith.constant 0 : index
    %c0_23 = arith.constant 0 : index
    %50 = vector.load %arg6[%c1, %c0_22, %c0_23] : memref<3x8x8xbf16, #tpu.memory_space<vmem>>, vector<1x8x8xbf16>
    %51 = vector.shape_cast %50 : vector<1x8x8xbf16> to vector<8x8xbf16>
    %52 = arith.truncf %12 : vector<8x256xf32> to vector<8x256xbf16>
    %cst_24 = arith.constant dense<0.000000e+00> : vector<8x256xf32>
    %53 = tpu.matmul %51, %52, %cst_24 {dimension_numbers = #tpu.dot_dimension_numbers<[1], [0], [0], [1], [0, 0, 1, 1], [], []>} : vector<8x8xbf16>, vector<8x256xbf16>, vector<8x256xf32> -> vector<8x256xf32>
    %54 = arith.addf %49, %53 : vector<8x256xf32>
    %c2 = arith.constant 2 : index
    %c0_25 = arith.constant 0 : index
    %c0_26 = arith.constant 0 : index
    %55 = vector.load %arg6[%c2, %c0_25, %c0_26] : memref<3x8x8xbf16, #tpu.memory_space<vmem>>, vector<1x8x8xbf16>
    %56 = vector.shape_cast %55 : vector<1x8x8xbf16> to vector<8x8xbf16>
    %57 = arith.truncf %45 : vector<8x256xf32> to vector<8x256xbf16>
    %cst_27 = arith.constant dense<0.000000e+00> : vector<8x256xf32>
    %58 = tpu.matmul %56, %57, %cst_27 {dimension_numbers = #tpu.dot_dimension_numbers<[1], [0], [0], [1], [0, 0, 1, 1], [], []>} : vector<8x8xbf16>, vector<8x256xbf16>, vector<8x256xf32> -> vector<8x256xf32>
    %59 = arith.addf %54, %58 : vector<8x256xf32>
    %c0_28 = arith.constant 0 : index
    %c0_29 = arith.constant 0 : index
    %60 = vector.load %arg7[%c0_28, %c0_29] : memref<8x1xf32, #tpu.memory_space<vmem>>, vector<8x1xf32>
    %61 = vector.broadcast %60 : vector<8x1xf32> to vector<8x256xf32>
    %62 = arith.addf %59, %61 : vector<8x256xf32>
    %cst_30 = arith.constant 2.000000e-01 : f32
    %63 = vector.broadcast %cst_30 : f32 to vector<8x256xf32>
    %64 = arith.mulf %63, %62 : vector<8x256xf32>
    %65 = arith.maximumf %62, %64 : vector<8x256xf32>
    %c0_31 = arith.constant 0 : index
    %c0_32 = arith.constant 0 : index
    %66 = vector.load %arg8[%c0_31, %c0_32] : memref<32x8xbf16, #tpu.memory_space<vmem>>, vector<32x8xbf16>
    %67 = arith.truncf %65 : vector<8x256xf32> to vector<8x256xbf16>
    %cst_33 = arith.constant dense<0.000000e+00> : vector<32x256xf32>
    %68 = tpu.matmul %66, %67, %cst_33 {dimension_numbers = #tpu.dot_dimension_numbers<[1], [0], [0], [1], [0, 0, 1, 1], [], []>} : vector<32x8xbf16>, vector<8x256xbf16>, vector<32x256xf32> -> vector<32x256xf32>
    %c0_34 = arith.constant 0 : index
    %c0_35 = arith.constant 0 : index
    %69 = vector.load %arg9[%c0_34, %c0_35] : memref<32x1xf32, #tpu.memory_space<vmem>>, vector<32x1xf32>
    %70 = vector.broadcast %69 : vector<32x1xf32> to vector<32x256xf32>
    %71 = arith.addf %68, %70 : vector<32x256xf32>
    %72 = arith.addf %71, %1 : vector<32x256xf32>
    %cst_36 = arith.constant 2.000000e-01 : f32
    %73 = vector.broadcast %cst_36 : f32 to vector<32x256xf32>
    %74 = arith.mulf %73, %72 : vector<32x256xf32>
    %75 = arith.maximumf %72, %74 : vector<32x256xf32>
    %c0_37 = arith.constant 0 : index
    %c0_38 = arith.constant 0 : index
    %c0_39 = arith.constant 0 : index
    %76 = vector.load %arg10[%c0_37, %c0_38, %c0_39] : memref<1x32x256xf32, #tpu.memory_space<vmem>>, vector<1x32x256xf32>
    %77 = vector.shape_cast %76 : vector<1x32x256xf32> to vector<32x256xf32>
    %78 = vector.shape_cast %75 : vector<32x256xf32> to vector<1x32x256xf32>
    tpu.vector_store %arg10[%c0_37, %c0_38, %c0_39], %78 {strides = array<i32>} : memref<1x32x256xf32, #tpu.memory_space<vmem>>, vector<1x32x256xf32>,
    return
  }
  func.func @transform_0(%arg0: i32, %arg1: i32) -> (i32, i32, i32) {
    %c0_i32 = arith.constant 0 : i32
    %c0_i32_0 = arith.constant 0 : i32
    return %arg0, %c0_i32, %arg1 : i32, i32, i32
  }
  func.func @transform_1(%arg0: i32, %arg1: i32) -> (i32, i32, i32, i32) {
    %c0_i32 = arith.constant 0 : i32
    %c0_i32_0 = arith.constant 0 : i32
    %c0_i32_1 = arith.constant 0 : i32
    return %arg0, %arg1, %c0_i32, %c0_i32_0 : i32, i32, i32, i32
  }
  func.func @transform_2(%arg0: i32, %arg1: i32) -> (i32, i32) {
    %c0_i32 = arith.constant 0 : i32
    %c0_i32_0 = arith.constant 0 : i32
    %c0_i32_1 = arith.constant 0 : i32
    return %c0_i32, %c0_i32_0 : i32, i32
  }
  func.func @transform_3(%arg0: i32, %arg1: i32) -> (i32, i32) {
    %c0_i32 = arith.constant 0 : i32
    %c0_i32_0 = arith.constant 0 : i32
    %c0_i32_1 = arith.constant 0 : i32
    return %c0_i32, %c0_i32_0 : i32, i32
  }
  func.func @transform_4(%arg0: i32, %arg1: i32) -> (i32, i32, i32) {
    %c0_i32 = arith.constant 0 : i32
    %c0_i32_0 = arith.constant 0 : i32
    %c0_i32_1 = arith.constant 0 : i32
    %c0_i32_2 = arith.constant 0 : i32
    return %c0_i32, %c0_i32_0, %c0_i32_1 : i32, i32, i32
  }
  func.func @transform_5(%arg0: i32, %arg1: i32) -> (i32, i32) {
    %c0_i32 = arith.constant 0 : i32
    %c0_i32_0 = arith.constant 0 : i32
    %c0_i32_1 = arith.constant 0 : i32
    return %c0_i32, %c0_i32_0 : i32, i32
  }
  func.func @transform_6(%arg0: i32, %arg1: i32) -> (i32, i32) {
    %c0_i32 = arith.constant 0 : i32
    %c0_i32_0 = arith.constant 0 : i32
    %c0_i32_1 = arith.constant 0 : i32
    return %c0_i32, %c0_i32_0 : i32, i32
  }
  func.func @transform_7(%arg0: i32, %arg1: i32) -> (i32, i32) {
    %c0_i32 = arith.constant 0 : i32
    %c0_i32_0 = arith.constant 0 : i32
    %c0_i32_1 = arith.constant 0 : i32
    return %c0_i32, %c0_i32_0 : i32, i32
  }
  func.func @transform_8(%arg0: i32, %arg1: i32) -> (i32, i32, i32) {
    %c0_i32 = arith.constant 0 : i32
    %c0_i32_0 = arith.constant 0 : i32
    return %arg0, %c0_i32, %arg1 : i32, i32, i32
  }
}

</mosaic_0001>

<bundles_post_ra>
// kernel: tpu_custom_call.1
= control target key start
LH: loop header
LB: loop body
LE: loop exit
PB: predicated region body
PF: predicated region fallthrough
CT: control target
= control target key end

     0   :  { %13 = vsyncpa [#allocation3], 0  ;;  %s1389_s0 = inlined_call_operand.vmem [shape: f32[2,32,256], index: 0, kind: input, shape index: {}]   ;;  %s1390_s1 = inlined_call_operand.vmem [shape: f32[2,1,32,2], index: 1, kind: input, shape index: {}]   ;;  %s1391_s2 = inlined_call_operand.hbm [shape: bf16[8,32], index: 2, kind: input, shape index: {}]   ;;  %s1392_s3 = inlined_call_operand.vmem [shape: f32[8,1], index: 3, kind: input, shape index: {}]   ;;  %s1393_s4 = inlined_call_operand.vmem [shape: bf16[3,8,8], index: 4, kind: input, shape index: {}]   ;;  %s1394_s5 = inlined_call_operand.vmem [shape: f32[8,1], index: 5, kind: input, shape index: {}]   ;;  %s1395_s6 = inlined_call_operand.vmem [shape: bf16[32,8], index: 6, kind: input, shape index: {}]   ;;  %s1396_s7 = inlined_call_operand.vmem [shape: f32[32,1], index: 7, kind: input, shape index: {}]   ;;  %s1397_s8 = inlined_call_operand.hbm [shape: f32[2,32,256], index: 8, kind: output, shape index: {}]  }
   0x1   :  { %14 = vsyncpa [#allocation4], 0 }
   0x2   :  { %16 = vsyncpa [#allocation4 + $0x1], 0  ;;  %s1185_s27 = smov 0   ;;  %s1187_s28 = smov 0  }
   0x3   :  { %s1189_s29 = smov 0   ;;  %s1191_s30 = smov 0  }
   0x4   :  { %s1193_s9 = smov 0   ;;  %s1195_s10 = smov 0  }
   0x5 LB: > { %s888_s11 = sadd.s32 4294967295, %s1131_s10   ;;  %s889_s12 = sadd.s32 4294967294, %s1131_s10   ;;  %s1131_s10 = sphi %s1195_s10, %s22_s10   ;;  %s1127_s9 = sphi %s1193_s9, %s1404_s9   ;;  %s1123_s30 = sphi %s1191_s30, %s1403_s30   ;;  %s1119_s29 = sphi %s1189_s29, %s1402_s29   ;;  %s1115_s28 = sphi %s1187_s28, %s1401_s28   ;;  %s1111_s27 = sphi %s1185_s27, %s1400_s27  }
   0x6   : > { %s34_s13 = sadd.s32 1, %s1127_s9  ;;  %s225_s14 = sadd.s32 1, %s1119_s29 }
   0x7   : > { %p36_p0 = scmp.ge.s32.totalorder %s34_s13, 2  ;;  %p235_p1 = scmp.ne.s32.totalorder %s1119_s29, %s1115_s28 }
   0x8   : > { %p236_p2 = scmp.eq.s32.totalorder %s888_s11, 1  ;;  %p241_p3 = scmp.ne.s32.totalorder %s1115_s28, %s1111_s27 }
   0x9   : > { %s1406_s13 = smov (%p36_p0, %s34_s13), 0  ;;  %p242_p5 = scmp.eq.s32.totalorder %s889_s12, 1 }
   0xa   : > { %p1225_p4 = por %p236_p2, %p235_p1  ;;  %s220_s16 = ssub.s32 %s1127_s9, %s1406_s13 }
   0xb   : > { %p890_p6 = scmp.ge.s32.totalorder %s1131_s10, 1  ;;  %p223_p7 = scmp.eq.s32.totalorder %s220_s16, 0 }
   0xc   : > { %p1232_p8 = por %p242_p5, %p241_p3  ;;  %p249_p9 = scmp.lt.s32.totalorder %s1131_s10, 3 }
   0xd   : > { %s1238_s18 = scalar_select %p223_p7, %s1119_s29, %s225_s14  }
   0xe   : > { %p250_p10 = pnand %p890_p6, %p249_p9  ;;  %p947_p11 = scmp.eq.s32.totalorder %s888_s11, 0 }
   0xf   : > { %s261_s21 = sshll.u32 %s1391_s2, 4  ;;  %s1133_s22 = smov [#allocation2]   ;;  %s262_s21 = int_to_ptr.hbm [resolvable:$true] %s261_s21 }
  0x10   : > { %p939_p12 = pneg %p250_p10  ;;  %s263_s23 = sshll.u32 %s1133_s22, 4  ;;  %s264_s23 = int_to_ptr.vmem [resolvable:$true] %s263_s23 }
  0x11   : > { %316 = sbr.rel (%p250_p10) target bundleno = 637 (0x27d), region = 52 }
  0x12   : > { %p940_p13 = pnand %p947_p11, %p939_p12 }
  0x14   : > { %942 = dma.hbm_to_vmem [thread:$0]  (!%p940_p13), %s262_s21, 64, %s264_s23, [#allocation3]  }
  0x16   : > { %1102 = dma.done.wait (%p947_p11), [#allocation3], 64  }
  0x17   : > { %1104 = vsyncadd (%p947_p11), [#allocation3], 4294967232  ;;  %p365_p0 = scmp.lt.s32.totalorder %s1123_s30, 1  ;;  %v1134_v0 = vmov 0   ;;  %v402_v16 = vld [vmem:[%s1392_s3] sm:$0xff]  ;;  %vm408_vm0 = vcmask 261120   ;;  %v469_v48 = vlaneseq }
  0x18   : > { %1005 = vset.pattern.permute.xlu0 %v1134_v0  ;;  %1011 = vset.pattern.permute.xlu1 %v1134_v0  ;;  %v401_v19 = vld [vmem:[#allocation2] sm:$0xf]  ;;  %v1135_v21 = vmov 1   ;;  %vm515_vm1 = vcmask 1043456   ;;  %s1136_s23 = smov 1   ;;  %v645_v44 = vld [vmem:[%s1396_s7 + $0x18] sm:$0xff] }
  0x19   : > { %s366_s24 = scalar_select %p365_p0, %s1123_s30, 1  ;;  %405 = vperm.xlu0 %1005, %v402_v16   ;;  %1017 = vset.pattern.permute.xlu2 %v1135_v21  ;;  %v642_v38 = vld [vmem:[%s1396_s7] sm:$0xff]  ;;  %v643_v46 = vld [vmem:[%s1396_s7 + $0x8] sm:$0xff]  ;;  %vm511_vm2 = vcmask 64512   ;;  %v470_v50 = vand.u32 127, %v469_v48  ;;  %v644_v55 = vld [vmem:[%s1396_s7 + $0x10] sm:$0xff] }
  0x1a   : > { %s1137_s12 = smov 127   ;;  %v903_v47 = vld [vmem:[%s1393_s4 + $0x4] sm:$0xf]  ;;  %v504_v63 = vld [vmem:[%s1393_s4] sm:$0xf]  ;;  %s361_s21 = sand.u32 1, %s1115_s28  }
  0x1b   : > { %s928_s25 = sshll.u32 %s366_s24, 6  ;;  %s929_s26 = sshll.u32 %s366_s24, 5  ;;  %v624_v51 = vld [vmem:[%s1394_s5] sm:$0xff]  ;;  %vm478_vm3 = vcmp.lt.s32.totalorder %v470_v50, 1  ;;  %vm472_vm4 = vcmp.eq.s32.totalorder %v470_v50, 0  ;;  %vm494_vm5 = vcmp.lt.s32.totalorder %v470_v50, 127 }
  0x1c   : > { %s372_s14 = scalar_lea.vmem %s1389_s0, %s928_s25  ;;  %s382_s20 = scalar_lea.vmem %s1390_s1, %s929_s26 }
  0x1d   : > { %v1250_v1 = vld [vmem:[%s372_s14 + $0x20] sm:$0xff]  ;;  %v1252_v2 = vld [vmem:[%s372_s14 + $0x30] sm:$0xff]  ;;  %v1263_v6 = vld [vmem:[%s372_s14 + $0x28] sm:$0xff]  ;;  %s895_s22 = sshll.u32 %s361_s21, 6  ;;  %s932_s24 = sshll.u32 %s1123_s30, 6 }
  0x1e   : > { %v1254_v3 = vld [vmem:[%s372_s14] sm:$0xff]  ;;  %v399_v4 = vpack.c.bf16 %v1252_v2, %v1250_v1  ;;  %v1261_v5 = vld [vmem:[%s372_s14 + $0x10] sm:$0xff]  ;;  %v1265_v7 = vld [vmem:[%s372_s14 + $0x38] sm:$0xff]  ;;  %s772_s11 = scalar_lea.hbm %s1397_s8, %s932_s24  ;;  %s1069_s24 = scalar_lea.hbm %s1397_s8, 128 }
  0x1f   : > { %v400_v8 = vpack.c.bf16 %v1265_v7, %v1263_v6  ;;  %v1269_v9 = vld [vmem:[%s372_s14 + $0x8] sm:$0xff]  ;;  %v1271_v10 = vld [vmem:[%s372_s14 + $0x18] sm:$0xff]  ;;  %v397_v11 = vpack.c.bf16 %v1261_v5, %v1254_v3  ;;  %v395_v12 = vld [vmem:[%s382_s20 + $0x10] sm:$0xff]  ;;  %s759_s14 = scalar_lea.sflag [#allocation4], %s361_s21 }
  0x20   : > { %418 = vmatpush.bf16.msra.mxu2 %v399_v4  ;;  %v396_v13 = vld [vmem:[%s382_s20 + $0x18] sm:$0xff]  ;;  %v398_v14 = vpack.c.bf16 %v1271_v10, %v1269_v9  ;;  %v393_v17 = vld [vmem:[%s382_s20] sm:$0xff]  ;;  %v394_v18 = vld [vmem:[%s382_s20 + $0x8] sm:$0xff] }
  0x21   : > { %431 = vmatpush.bf16.msra.mxu1 %v400_v8  ;;  %v443_v15 = vpack.c.bf16 %v396_v13, %v395_v12  ;;  %v442_v20 = vpack.c.bf16 %v394_v18, %v393_v17 }
  0x24   : > { %419 = vmatpush.bf16.msra.mxu2 %v397_v11 }
  0x25   : > { %432 = vmatpush.bf16.msra.mxu1 %v398_v14 }
  0x27   : > { %900 = vmatmul.msk.bf16.vlgmr.msra.gmra.mxu2 %vm408_vm0, %v401_v19 }
  0x28   : > { %450 = vmatpush.bf16.msrb.mxu2 %v443_v15  ;;  %901 = vmatmul.msk.bf16.vlgmr.msra.gmra.mxu1 %vm408_vm0, %v401_v19 }
  0x2c   : > { %451 = vmatpush.bf16.msrb.mxu2 %v442_v20  ;;  %v908_v20 = vld [vmem:[%s1393_s4 + $0x8] sm:$0xf] }
  0x37   : > { %902 = vmatmul.msk.bf16.vlgmr.msrb.gmra.mxu2 %vm408_vm0, %v401_v19 }
  0x8b   : > { %v406_v22 = vpop.permute.xlu0 %405 }
  0xa5   : > { %v434_v23 = vpop.f32.mrf.mxu1 }
  0xa6   : > { %v435_v24 = vadd.f32 %v434_v23, %v406_v22 }
  0xa8   : > { %v439_v25 = vmul.f32 0.2, %v435_v24 }
  0xaa   : > { %v421_v26 = vpop.f32.mrf.mxu2  ;;  %v441_v28 = vmax.f32 %v435_v24, %v439_v25 }
  0xab   : > { %v422_v27 = vadd.f32 %v421_v26, %v406_v22 }
  0xac   : > { %v510_v31 = vpack.c.bf16 %v441_v28, %v441_v28 }
  0xad   : > { %v438_v29 = vmul.f32 0.2, %v422_v27  ;;  %v436_v30 = vpop.f32.mrf.mxu1 }
  0xae   : > { %v520_v36 = vsel %vm515_vm1, %v510_v31, 0 }
  0xaf   : > { %v440_v32 = vmax.f32 %v422_v27, %v438_v29 }
  0xb1   : > { %v1006_v33 = vpack.i.bf16 %v441_v28, %v440_v32  ;;  %v509_v34 = vpack.c.bf16 %v440_v32, %v440_v32 }
  0xb2   : > { %v423_v35 = vpop.f32.mrf.mxu2 }
  0xb3   : > { %1007 = vrot.lane.b32.xlu0 %v1006_v33, %s1136_s23  ;;  %v517_v37 = vsel %vm515_vm1, %v509_v34, 0  ;;  %s1334_s23 = scalar_lea.vmem [#allocation5], %s895_s22 }
  0xb4   : > { %529 = vmatpush.bf16.msra.mxu3 %v517_v37  ;;  %s773_s30 = sshll.u32 %s1334_s23, 4  ;;  %s774_s30 = int_to_ptr.vmem [resolvable:$true] %s773_s30 }
  0xb7   : > { %904 = vmatmul.msk.bf16.vlgmr.msra.gmra.mxu3 %vm511_vm2, %v903_v47 }
  0xb8   : > { %542 = vmatpush.bf16.msrb.mxu3 %v520_v36 }
  0xba   : > { %v453_v39 = vpop.f32.mrf.mxu2 }
  0xbb   : > { %v454_v40 = vadd.f32 %v453_v39, %v406_v22  ;;  %648 = vperm.xlu0 %1005, %v642_v38  }
  0xbd   : > { %v457_v41 = vmul.f32 0.2, %v454_v40 }
  0xbf   : > { %v458_v42 = vmax.f32 %v454_v40, %v457_v41 }
  0xc1   : > { %v466_v43 = vmul.f32 0.0, %v458_v42 }
  0xc2   : > { %v455_v45 = vpop.f32.mrf.mxu2 }
  0xc3   : > { %499 = vperm.xlu2 %1017, %v466_v43   ;;  %483 = vperm.xlu1 %1011, %v466_v43  }
  0xc4   : > { %663 = vperm.xlu0 %1005, %v645_v44  }
  0xc7   : > { %905 = vmatmul.msk.bf16.vlgmr.msrb.gmra.mxu3 %vm511_vm2, %v903_v47  ;;  %v930_v47 = vld [vmem:[%s1395_s6] sm:$0xff] }
  0xcb   : > { %1013 = vrot.lane.b32.xlu1 %v1006_v33, %s1137_s12  ;;  %1018 = vset.pattern.permute.xlu2 %v1134_v0  ;;  %v471_v0 = vadd.s32 128, %v470_v50  ;;  %s775_s12 = sshll.u32 %s772_s11, 4  ;;  %s776_s12 = int_to_ptr.hbm [resolvable:$true] %s775_s12 }
  0xcc   : > { %627 = vperm.xlu2 %1018, %v624_v51   ;;  %s1063_s16 = sshra.s32 %s776_s12, 4  ;;  %s1064_s16 = int_to_ptr.hbm [resolvable:$true] %s1063_s16 }
  0xcd   : > { %vm489_vm6 = vcmp.eq.s32.totalorder %v471_v0, 255  ;;  %s1065_s19 = scalar_lea.hbm %s1064_s16, 64  ;;  %p1070_p5 = scmp.lt.s32.totalorder %s1064_s16, %s1397_s8 }
  0xce   : > { %p1066_p1 = scmp.ne.s32.totalorder %s1064_s16, %s1065_s19  ;;  %p1071_p6 = scmp.lt.s32.totalorder %s1069_s24, %s1065_s19 }
  0xd0   : > { %p1067_p2 = pnand %p1066_p1, %p1225_p4  ;;  %p1072_p7 = por %p1071_p6, %p1070_p5 }
  0xd2   : > { %p1068_p3 = pneg %p1067_p2 }
  0xd3   : > { %653 = vperm.xlu1 %1011, %v643_v46  }
  0xd4   : > { %658 = vperm.xlu2 %1018, %v644_v55   ;;  %p1073_p9 = pnand %p1072_p7, %p1068_p3 }
 0x11d   : > { %v500_v12 = vpop.permute.xlu2 %499 }
 0x125   : > { %v1008_v49 = vpop.permute.xlu0 %1007 }
 0x126   : > { %v1010_v52 = vunpack.i.h.bf16 %v1008_v49  ;;  %v1009_v53 = vunpack.i.l.bf16 %v1008_v49  ;;  %v628_v33 = vpop.permute.xlu2 %627  ;;  %v931_v49 = vld [vmem:[%s1395_s6 + $0x8] sm:$0xff] }
 0x128   : > { %v479_v54 = vsel %vm478_vm3, %v1009_v53, %v1010_v52  ;;  %v480_v57 = vsel %vm478_vm3, %v1010_v52, %v1009_v53 }
 0x129   : > { %v506_v59 = vpack.c.bf16 %v479_v54, %v479_v54 }
 0x12b   : > { %v555_v62 = vsel %vm515_vm1, %v506_v59, 0 }
 0x12d   : > { %v649_v50 = vpop.permute.xlu0 %648 }
 0x135   : > { %v484_v56 = vpop.permute.xlu1 %483 }
 0x136   : > { %v486_v58 = vsel %vm472_vm4, %v484_v56, %v480_v57 }
 0x137   : > { %v505_v60 = vpack.c.bf16 %v486_v58, %v486_v58 }
 0x139   : > { %v552_v61 = vsel %vm515_vm1, %v505_v60, 0 }
 0x13a   : > { %564 = vmatpush.bf16.msra.mxu0 %v552_v61  ;;  %v531_v21 = vpop.f32.mrf.mxu3 }
 0x13d   : > { %v1014_v4 = vpop.permute.xlu1 %1013  ;;  %906 = vmatmul.msk.bf16.vlgmr.msra.gmra.mxu0 %vm511_vm2, %v504_v63 }
 0x13e   : > { %577 = vmatpush.bf16.msrb.mxu0 %v555_v62  ;;  %v1016_v8 = vunpack.i.h.bf16 %v1014_v4  ;;  %v1015_v11 = vunpack.i.l.bf16 %v1014_v4 }
 0x140   : > { %v496_v13 = vsel %vm494_vm5, %v1016_v8, %v1015_v11  ;;  %v495_v14 = vsel %vm494_vm5, %v1015_v11, %v1016_v8 }
 0x141   : > { %v585_v15 = vpack.c.bf16 %v495_v14, %v495_v14  ;;  %v503_v16 = vsel %vm489_vm6, %v500_v12, %v496_v13  ;;  %v659_v13 = vpop.permute.xlu2 %658 }
 0x142   : > { %v586_v17 = vpack.c.bf16 %v503_v16, %v503_v16  ;;  %v533_v22 = vpop.f32.mrf.mxu3 }
 0x143   : > { %v591_v18 = vsel %vm515_vm1, %v585_v15, 0  ;;  %v664_v22 = vpop.permute.xlu0 %663 }
 0x144   : > { %603 = vmatpush.bf16.msra.mxu2 %v591_v18  ;;  %v594_v19 = vsel %vm515_vm1, %v586_v17, 0 }
 0x145   : > { %616 = vmatpush.bf16.msra.mxu3 %v594_v19  ;;  %v654_v60 = vpop.permute.xlu1 %653 }
 0x147   : > { %909 = vmatmul.msk.bf16.vlgmr.msra.gmra.mxu2 %vm511_vm2, %v908_v20 }
 0x148   : > { %910 = vmatmul.msk.bf16.vlgmr.msra.gmra.mxu3 %vm511_vm2, %v908_v20 }
 0x14a   : > { %v544_v23 = vpop.f32.mrf.mxu3 }
 0x14d   : > { %907 = vmatmul.msk.bf16.vlgmr.msrb.gmra.mxu0 %vm511_vm2, %v504_v63 }
 0x152   : > { %v546_v24 = vpop.f32.mrf.mxu3 }
 0x1ba   : > { %v566_v25 = vpop.f32.mrf.mxu0 }
 0x1bb   : > { %v567_v27 = vadd.f32 %v566_v25, %v531_v21 }
 0x1c2   : > { %v568_v26 = vpop.f32.mrf.mxu0 }
 0x1ca   : > { %v579_v28 = vpop.f32.mrf.mxu0  ;;  %v605_v29 = vpop.f32.mrf.mxu2 }
 0x1cb   : > { %v580_v30 = vadd.f32 %v579_v28, %v544_v23  ;;  %v622_v31 = vadd.f32 %v605_v29, %v567_v27  ;;  %v618_v32 = vpop.f32.mrf.mxu3 }
 0x1cd   : > { %v630_v34 = vadd.f32 %v628_v33, %v622_v31  ;;  %v623_v35 = vadd.f32 %v618_v32, %v580_v30 }
 0x1cf   : > { %v632_v36 = vmul.f32 0.2, %v630_v34  ;;  %v631_v37 = vadd.f32 %v628_v33, %v623_v35 }
 0x1d1   : > { %v634_v38 = vmax.f32 %v630_v34, %v632_v36  ;;  %v633_v39 = vmul.f32 0.2, %v631_v37 }
 0x1d2   : > { %v581_v40 = vpop.f32.mrf.mxu0  ;;  %v607_v41 = vpop.f32.mrf.mxu2 }
 0x1d3   : > { %v640_v42 = vpack.c.bf16 %v634_v38, %v634_v38  ;;  %v620_v43 = vpop.f32.mrf.mxu3  ;;  %v635_v44 = vmax.f32 %v631_v37, %v633_v39 }
 0x1d5   : > { %v683_v45 = vsel %vm515_vm1, %v640_v42, 0  ;;  %v641_v46 = vpack.c.bf16 %v635_v44, %v635_v44 }
 0x1d6   : > { %695 = vmatpush.bf16.msra.mxu0 %v683_v45 }
 0x1d7   : > { %v686_v48 = vsel %vm515_vm1, %v641_v46, 0 }
 0x1d8   : > { %714 = vmatpush.bf16.msrb.mxu1 %v686_v48 }
 0x1d9   : > { %919 = vmatmul.msk.bf16.vlgmr.msra.gmra.mxu0 %vm511_vm2, %v930_v47 }
 0x1db   : > { %921 = vmatmul.msk.bf16.vlgmr.msrb.gmra.mxu1 %vm511_vm2, %v930_v47 }
 0x1e9   : > { %920 = vmatmul.msk.bf16.gmra.mxu0 %vm511_vm2, %v931_v49 }
 0x1eb   : > { %922 = vmatmul.msk.bf16.gmra.mxu1 %vm511_vm2, %v931_v49 }
 0x256   : > { %v697_v51 = vpop.f32.mrf.mxu0 }
 0x257   : > { %v698_v52 = vadd.f32 %v697_v51, %v649_v50 }
 0x258   : > { %v716_v53 = vpop.f32.mrf.mxu1 }
 0x259   : > { %v726_v54 = vadd.f32 %v698_v52, %v1254_v3  ;;  %v717_v55 = vadd.f32 %v716_v53, %v649_v50 }
 0x25b   : > { %v734_v56 = vmul.f32 0.2, %v726_v54  ;;  %v727_v57 = vadd.f32 %v717_v55, %v1269_v9 }
 0x25d   : > { %v742_v58 = vmax.f32 %v726_v54, %v734_v56  ;;  %v735_v59 = vmul.f32 0.2, %v727_v57 }
 0x25e   : > { %v699_v61 = vpop.f32.mrf.mxu0 }
 0x25f   : > { %750 = vst [vmem:[%s1334_s23] sm:$0xff] %v742_v58  ;;  %v743_v62 = vmax.f32 %v727_v57, %v735_v59  ;;  %v700_v63 = vadd.f32 %v699_v61, %v654_v60 }
 0x260   : > { %v718_v0 = vpop.f32.mrf.mxu1 }
 0x261   : > { %751 = vst [vmem:[%s1334_s23 + $0x8] sm:$0xff] %v743_v62  ;;  %v728_v3 = vadd.f32 %v700_v63, %v1261_v5  ;;  %v719_v4 = vadd.f32 %v718_v0, %v654_v60 }
 0x263   : > { %v736_v8 = vmul.f32 0.2, %v728_v3  ;;  %v729_v9 = vadd.f32 %v719_v4, %v1271_v10 }
 0x265   : > { %v744_v11 = vmax.f32 %v728_v3, %v736_v8  ;;  %v737_v12 = vmul.f32 0.2, %v729_v9 }
 0x266   : > { %v702_v14 = vpop.f32.mrf.mxu0 }
 0x267   : > { %752 = vst [vmem:[%s1334_s23 + $0x10] sm:$0xff] %v744_v11  ;;  %v745_v15 = vmax.f32 %v729_v9, %v737_v12  ;;  %v703_v16 = vadd.f32 %v702_v14, %v659_v13 }
 0x268   : > { %v721_v17 = vpop.f32.mrf.mxu1 }
 0x269   : > { %753 = vst [vmem:[%s1334_s23 + $0x18] sm:$0xff] %v745_v15  ;;  %v730_v18 = vadd.f32 %v703_v16, %v1250_v1  ;;  %v722_v19 = vadd.f32 %v721_v17, %v659_v13 }
 0x26b   : > { %v738_v5 = vmul.f32 0.2, %v730_v18  ;;  %v731_v20 = vadd.f32 %v722_v19, %v1263_v6 }
 0x26d   : > { %v746_v10 = vmax.f32 %v730_v18, %v738_v5  ;;  %v739_v21 = vmul.f32 0.2, %v731_v20 }
 0x26e   : > { %v704_v23 = vpop.f32.mrf.mxu0 }
 0x26f   : > { %754 = vst [vmem:[%s1334_s23 + $0x20] sm:$0xff] %v746_v10  ;;  %v747_v24 = vmax.f32 %v731_v20, %v739_v21  ;;  %v705_v25 = vadd.f32 %v704_v23, %v664_v22 }
 0x270   : > { %v723_v26 = vpop.f32.mrf.mxu1 }
 0x271   : > { %755 = vst [vmem:[%s1334_s23 + $0x28] sm:$0xff] %v747_v24  ;;  %v732_v1 = vadd.f32 %v705_v25, %v1252_v2  ;;  %v724_v6 = vadd.f32 %v723_v26, %v664_v22 }
 0x273   : > { %v740_v27 = vmul.f32 0.2, %v732_v1  ;;  %v733_v28 = vadd.f32 %v724_v6, %v1265_v7 }
 0x275   : > { %v748_v29 = vmax.f32 %v732_v1, %v740_v27  ;;  %v741_v30 = vmul.f32 0.2, %v733_v28 }
 0x277   : > { %756 = vst [vmem:[%s1334_s23 + $0x30] sm:$0xff] %v748_v29  ;;  %v749_v31 = vmax.f32 %v733_v28, %v741_v30 }
 0x279   : > { %757 = vst [vmem:[%s1334_s23 + $0x38] sm:$0xff] %v749_v31 }
 0x27a   : > { %1076 = shalt.err (!%p1073_p9)
}
 0x27b   : > { %s1138_s21 = smov 256   ;;  %s1139_s23 = smov 16  }
 0x27c   : > { %937 = dma.vmem_to_hbm [thread:$0]  (%p1225_p4), %s774_s30, 1024, %s776_s12, %s759_s14, %s1138_s21, %s1138_s21, %s1139_s23  }
 0x27d PF: > { %p949_p10 = scmp.ge.s32.totalorder %s1131_s10, 2  ;;  %s790_s11 = sand.u32 1, %s1111_s27  }
 0x27e   : > { %s791_s20 = scalar_lea.sflag [#allocation4], %s790_s11 }
 0x27f   : > { %p944_p11 = pnand %p949_p10, %p1232_p8 }
 0x281   : > { %p945_p12 = pneg %p944_p11 }
 0x283   : > { %1106 = dma.done.wait (%p945_p12), %s791_s20, 1024  }
 0x284   : > { %1108 = vsyncadd (%p945_p12), %s791_s20, 4294966272  ;;  %s22_s10 = sadd.s32 1, %s1131_s10   ;;  %s1400_s27 = smov %s1115_s28 }
 0x285   : > { %p19_p13 = scmp.ge.s32.totalorder %s22_s10, 4   ;;  %s1401_s28 = smov %s1119_s29 }
 0x286   : > { %s1402_s29 = smov %s1238_s18  ;;  %s1403_s30 = smov %s1127_s9 }
 0x287   : > { %s1404_s9 = smov %s1406_s13  ;;  %21 = sbr.rel (!%p19_p13) target bundleno = 5 (0x5), region = 97 }
 0x28c   :  { %797 = vsyncpa [#allocation3], 1 }
 0x28d   :  { %799 = vsyncpa [#allocation3 + $0x1], 1 }
 0x28e   :  { %800 = vsyncpa [#allocation4], 1 }
 0x28f   :  { %802 = vsyncpa [#allocation4 + $0x1], 1 }

// kernel: tpu_custom_call.1
= control target key start
LH: loop header
LB: loop body
LE: loop exit
PB: predicated region body
PF: predicated region fallthrough
CT: control target
= control target key end

     0   :  { %13 = vsyncpa [#allocation3], 0  ;;  %s1389_s0 = inlined_call_operand.vmem [shape: f32[2,32,256], index: 0, kind: input, shape index: {}]   ;;  %s1390_s1 = inlined_call_operand.vmem [shape: f32[2,1,32,2], index: 1, kind: input, shape index: {}]   ;;  %s1391_s2 = inlined_call_operand.hbm [shape: bf16[8,32], index: 2, kind: input, shape index: {}]   ;;  %s1392_s3 = inlined_call_operand.vmem [shape: f32[8,1], index: 3, kind: input, shape index: {}]   ;;  %s1393_s4 = inlined_call_operand.vmem [shape: bf16[3,8,8], index: 4, kind: input, shape index: {}]   ;;  %s1394_s5 = inlined_call_operand.vmem [shape: f32[8,1], index: 5, kind: input, shape index: {}]   ;;  %s1395_s6 = inlined_call_operand.vmem [shape: bf16[32,8], index: 6, kind: input, shape index: {}]   ;;  %s1396_s7 = inlined_call_operand.vmem [shape: f32[32,1], index: 7, kind: input, shape index: {}]   ;;  %s1397_s8 = inlined_call_operand.hbm [shape: f32[2,32,256], index: 8, kind: output, shape index: {}]  }
   0x1   :  { %14 = vsyncpa [#allocation4], 0 }
   0x2   :  { %16 = vsyncpa [#allocation4 + $0x1], 0  ;;  %s1185_s27 = smov 0   ;;  %s1187_s28 = smov 0  }
   0x3   :  { %s1189_s29 = smov 0   ;;  %s1191_s30 = smov 0  }
   0x4   :  { %s1193_s9 = smov 0   ;;  %s1195_s10 = smov 0  }
   0x5 LB: > { %s888_s11 = sadd.s32 4294967295, %s1131_s10   ;;  %s889_s12 = sadd.s32 4294967294, %s1131_s10   ;;  %s1131_s10 = sphi %s1195_s10, %s22_s10   ;;  %s1127_s9 = sphi %s1193_s9, %s1404_s9   ;;  %s1123_s30 = sphi %s1191_s30, %s1403_s30   ;;  %s1119_s29 = sphi %s1189_s29, %s1402_s29   ;;  %s1115_s28 = sphi %s1187_s28, %s1401_s28   ;;  %s1111_s27 = sphi %s1185_s27, %s1400_s27  }
   0x6   : > { %s34_s13 = sadd.s32 1, %s1127_s9  ;;  %s225_s14 = sadd.s32 1, %s1119_s29 }
   0x7   : > { %p36_p0 = scmp.ge.s32.totalorder %s34_s13, 2  ;;  %p235_p1 = scmp.ne.s32.totalorder %s1119_s29, %s1115_s28 }
   0x8   : > { %p236_p2 = scmp.eq.s32.totalorder %s888_s11, 1  ;;  %p241_p3 = scmp.ne.s32.totalorder %s1115_s28, %s1111_s27 }
   0x9   : > { %s1406_s13 = smov (%p36_p0, %s34_s13), 0  ;;  %p242_p5 = scmp.eq.s32.totalorder %s889_s12, 1 }
   0xa   : > { %p1225_p4 = por %p236_p2, %p235_p1  ;;  %s220_s16 = ssub.s32 %s1127_s9, %s1406_s13 }
   0xb   : > { %p890_p6 = scmp.ge.s32.totalorder %s1131_s10, 1  ;;  %p223_p7 = scmp.eq.s32.totalorder %s220_s16, 0 }
   0xc   : > { %p1232_p8 = por %p242_p5, %p241_p3  ;;  %p249_p9 = scmp.lt.s32.totalorder %s1131_s10, 3 }
   0xd   : > { %s1238_s18 = scalar_select %p223_p7, %s1119_s29, %s225_s14  }
   0xe   : > { %p250_p10 = pnand %p890_p6, %p249_p9  ;;  %p947_p11 = scmp.eq.s32.totalorder %s888_s11, 0 }
   0xf   : > { %s261_s21 = sshll.u32 %s1391_s2, 4  ;;  %s1133_s22 = smov [#allocation2]   ;;  %s262_s21 = int_to_ptr.hbm [resolvable:$true] %s261_s21 }
  0x10   : > { %p939_p12 = pneg %p250_p10  ;;  %s263_s23 = sshll.u32 %s1133_s22, 4  ;;  %s264_s23 = int_to_ptr.vmem [resolvable:$true] %s263_s23 }
  0x11   : > { %316 = sbr.rel (%p250_p10) target bundleno = 637 (0x27d), region = 52 }
  0x12   : > { %p940_p13 = pnand %p947_p11, %p939_p12 }
  0x14   : > { %942 = dma.hbm_to_vmem [thread:$0]  (!%p940_p13), %s262_s21, 64, %s264_s23, [#allocation3]  }
  0x16   : > { %1102 = dma.done.wait (%p947_p11), [#allocation3], 64  }
  0x17   : > { %1104 = vsyncadd (%p947_p11), [#allocation3], 4294967232  ;;  %p365_p0 = scmp.lt.s32.totalorder %s1123_s30, 1  ;;  %v1134_v0 = vmov 0   ;;  %v402_v16 = vld [vmem:[%s1392_s3] sm:$0xff]  ;;  %vm408_vm0 = vcmask 261120   ;;  %v469_v48 = vlaneseq }
  0x18   : > { %1005 = vset.pattern.permute.xlu0 %v1134_v0  ;;  %1011 = vset.pattern.permute.xlu1 %v1134_v0  ;;  %v401_v19 = vld [vmem:[#allocation2] sm:$0xf]  ;;  %v1135_v21 = vmov 1   ;;  %vm515_vm1 = vcmask 1043456   ;;  %s1136_s23 = smov 1   ;;  %v645_v44 = vld [vmem:[%s1396_s7 + $0x18] sm:$0xff] }
  0x19   : > { %s366_s24 = scalar_select %p365_p0, %s1123_s30, 1  ;;  %405 = vperm.xlu0 %1005, %v402_v16   ;;  %1017 = vset.pattern.permute.xlu2 %v1135_v21  ;;  %v642_v38 = vld [vmem:[%s1396_s7] sm:$0xff]  ;;  %v643_v46 = vld [vmem:[%s1396_s7 + $0x8] sm:$0xff]  ;;  %vm511_vm2 = vcmask 64512   ;;  %v470_v50 = vand.u32 127, %v469_v48  ;;  %v644_v55 = vld [vmem:[%s1396_s7 + $0x10] sm:$0xff] }
  0x1a   : > { %s1137_s12 = smov 127   ;;  %v903_v47 = vld [vmem:[%s1393_s4 + $0x4] sm:$0xf]  ;;  %v504_v63 = vld [vmem:[%s1393_s4] sm:$0xf]  ;;  %s361_s21 = sand.u32 1, %s1115_s28  }
  0x1b   : > { %s928_s25 = sshll.u32 %s366_s24, 6  ;;  %s929_s26 = sshll.u32 %s366_s24, 5  ;;  %v624_v51 = vld [vmem:[%s1394_s5] sm:$0xff]  ;;  %vm478_vm3 = vcmp.lt.s32.totalorder %v470_v50, 1  ;;  %vm472_vm4 = vcmp.eq.s32.totalorder %v470_v50, 0  ;;  %vm494_vm5 = vcmp.lt.s32.totalorder %v470_v50, 127 }
  0x1c   : > { %s372_s14 = scalar_lea.vmem %s1389_s0, %s928_s25  ;;  %s382_s20 = scalar_lea.vmem %s1390_s1, %s929_s26 }
  0x1d   : > { %v1250_v1 = vld [vmem:[%s372_s14 + $0x20] sm:$0xff]  ;;  %v1252_v2 = vld [vmem:[%s372_s14 + $0x30] sm:$0xff]  ;;  %v1263_v6 = vld [vmem:[%s372_s14 + $0x28] sm:$0xff]  ;;  %s895_s22 = sshll.u32 %s361_s21, 6  ;;  %s932_s24 = sshll.u32 %s1123_s30, 6 }
  0x1e   : > { %v1254_v3 = vld [vmem:[%s372_s14] sm:$0xff]  ;;  %v399_v4 = vpack.c.bf16 %v1252_v2, %v1250_v1  ;;  %v1261_v5 = vld [vmem:[%s372_s14 + $0x10] sm:$0xff]  ;;  %v1265_v7 = vld [vmem:[%s372_s14 + $0x38] sm:$0xff]  ;;  %s772_s11 = scalar_lea.hbm %s1397_s8, %s932_s24  ;;  %s1069_s24 = scalar_lea.hbm %s1397_s8, 128 }
  0x1f   : > { %v400_v8 = vpack.c.bf16 %v1265_v7, %v1263_v6  ;;  %v1269_v9 = vld [vmem:[%s372_s14 + $0x8] sm:$0xff]  ;;  %v1271_v10 = vld [vmem:[%s372_s14 + $0x18] sm:$0xff]  ;;  %v397_v11 = vpack.c.bf16 %v1261_v5, %v1254_v3  ;;  %v395_v12 = vld [vmem:[%s382_s20 + $0x10] sm:$0xff]  ;;  %s759_s14 = scalar_lea.sflag [#allocation4], %s361_s21 }
  0x20   : > { %418 = vmatpush.bf16.msra.mxu2 %v399_v4  ;;  %v396_v13 = vld [vmem:[%s382_s20 + $0x18] sm:$0xff]  ;;  %v398_v14 = vpack.c.bf16 %v1271_v10, %v1269_v9  ;;  %v393_v17 = vld [vmem:[%s382_s20] sm:$0xff]  ;;  %v394_v18 = vld [vmem:[%s382_s20 + $0x8] sm:$0xff] }
  0x21   : > { %431 = vmatpush.bf16.msra.mxu1 %v400_v8  ;;  %v443_v15 = vpack.c.bf16 %v396_v13, %v395_v12  ;;  %v442_v20 = vpack.c.bf16 %v394_v18, %v393_v17 }
  0x24   : > { %419 = vmatpush.bf16.msra.mxu2 %v397_v11 }
  0x25   : > { %432 = vmatpush.bf16.msra.mxu1 %v398_v14 }
  0x27   : > { %900 = vmatmul.msk.bf16.vlgmr.msra.gmra.mxu2 %vm408_vm0, %v401_v19 }
  0x28   : > { %450 = vmatpush.bf16.msrb.mxu2 %v443_v15  ;;  %901 = vmatmul.msk.bf16.vlgmr.msra.gmra.mxu1 %vm408_vm0, %v401_v19 }
  0x2c   : > { %451 = vmatpush.bf16.msrb.mxu2 %v442_v20  ;;  %v908_v20 = vld [vmem:[%s1393_s4 + $0x8] sm:$0xf] }
  0x37   : > { %902 = vmatmul.msk.bf16.vlgmr.msrb.gmra.mxu2 %vm408_vm0, %v401_v19 }
  0x8b   : > { %v406_v22 = vpop.permute.xlu0 %405 }
  0xa5   : > { %v434_v23 = vpop.f32.mrf.mxu1 }
  0xa6   : > { %v435_v24 = vadd.f32 %v434_v23, %v406_v22 }
  0xa8   : > { %v439_v25 = vmul.f32 0.2, %v435_v24 }
  0xaa   : > { %v421_v26 = vpop.f32.mrf.mxu2  ;;  %v441_v28 = vmax.f32 %v435_v24, %v439_v25 }
  0xab   : > { %v422_v27 = vadd.f32 %v421_v26, %v406_v22 }
  0xac   : > { %v510_v31 = vpack.c.bf16 %v441_v28, %v441_v28 }
  0xad   : > { %v438_v29 = vmul.f32 0.2, %v422_v27  ;;  %v436_v30 = vpop.f32.mrf.mxu1 }
  0xae   : > { %v520_v36 = vsel %vm515_vm1, %v510_v31, 0 }
  0xaf   : > { %v440_v32 = vmax.f32 %v422_v27, %v438_v29 }
  0xb1   : > { %v1006_v33 = vpack.i.bf16 %v441_v28, %v440_v32  ;;  %v509_v34 = vpack.c.bf16 %v440_v32, %v440_v32 }
  0xb2   : > { %v423_v35 = vpop.f32.mrf.mxu2 }
  0xb3   : > { %1007 = vrot.lane.b32.xlu0 %v1006_v33, %s1136_s23  ;;  %v517_v37 = vsel %vm515_vm1, %v509_v34, 0  ;;  %s1334_s23 = scalar_lea.vmem [#allocation5], %s895_s22 }
  0xb4   : > { %529 = vmatpush.bf16.msra.mxu3 %v517_v37  ;;  %s773_s30 = sshll.u32 %s1334_s23, 4  ;;  %s774_s30 = int_to_ptr.vmem [resolvable:$true] %s773_s30 }
  0xb7   : > { %904 = vmatmul.msk.bf16.vlgmr.msra.gmra.mxu3 %vm511_vm2, %v903_v47 }
  0xb8   : > { %542 = vmatpush.bf16.msrb.mxu3 %v520_v36 }
  0xba   : > { %v453_v39 = vpop.f32.mrf.mxu2 }
  0xbb   : > { %v454_v40 = vadd.f32 %v453_v39, %v406_v22  ;;  %648 = vperm.xlu0 %1005, %v642_v38  }
  0xbd   : > { %v457_v41 = vmul.f32 0.2, %v454_v40 }
  0xbf   : > { %v458_v42 = vmax.f32 %v454_v40, %v457_v41 }
  0xc1   : > { %v466_v43 = vmul.f32 0.0, %v458_v42 }
  0xc2   : > { %v455_v45 = vpop.f32.mrf.mxu2 }
  0xc3   : > { %499 = vperm.xlu2 %1017, %v466_v43   ;;  %483 = vperm.xlu1 %1011, %v466_v43  }
  0xc4   : > { %663 = vperm.xlu0 %1005, %v645_v44  }
  0xc7   : > { %905 = vmatmul.msk.bf16.vlgmr.msrb.gmra.mxu3 %vm511_vm2, %v903_v47  ;;  %v930_v47 = vld [vmem:[%s1395_s6] sm:$0xff] }
  0xcb   : > { %1013 = vrot.lane.b32.xlu1 %v1006_v33, %s1137_s12  ;;  %1018 = vset.pattern.permute.xlu2 %v1134_v0  ;;  %v471_v0 = vadd.s32 128, %v470_v50  ;;  %s775_s12 = sshll.u32 %s772_s11, 4  ;;  %s776_s12 = int_to_ptr.hbm [resolvable:$true] %s775_s12 }
  0xcc   : > { %627 = vperm.xlu2 %1018, %v624_v51   ;;  %s1063_s16 = sshra.s32 %s776_s12, 4  ;;  %s1064_s16 = int_to_ptr.hbm [resolvable:$true] %s1063_s16 }
  0xcd   : > { %vm489_vm6 = vcmp.eq.s32.totalorder %v471_v0, 255  ;;  %s1065_s19 = scalar_lea.hbm %s1064_s16, 64  ;;  %p1070_p5 = scmp.lt.s32.totalorder %s1064_s16, %s1397_s8 }
  0xce   : > { %p1066_p1 = scmp.ne.s32.totalorder %s1064_s16, %s1065_s19  ;;  %p1071_p6 = scmp.lt.s32.totalorder %s1069_s24, %s1065_s19 }
  0xd0   : > { %p1067_p2 = pnand %p1066_p1, %p1225_p4  ;;  %p1072_p7 = por %p1071_p6, %p1070_p5 }
  0xd2   : > { %p1068_p3 = pneg %p1067_p2 }
  0xd3   : > { %653 = vperm.xlu1 %1011, %v643_v46  }
  0xd4   : > { %658 = vperm.xlu2 %1018, %v644_v55   ;;  %p1073_p9 = pnand %p1072_p7, %p1068_p3 }
 0x11d   : > { %v500_v12 = vpop.permute.xlu2 %499 }
 0x125   : > { %v1008_v49 = vpop.permute.xlu0 %1007 }
 0x126   : > { %v1010_v52 = vunpack.i.h.bf16 %v1008_v49  ;;  %v1009_v53 = vunpack.i.l.bf16 %v1008_v49  ;;  %v628_v33 = vpop.permute.xlu2 %627  ;;  %v931_v49 = vld [vmem:[%s1395_s6 + $0x8] sm:$0xff] }
 0x128   : > { %v479_v54 = vsel %vm478_vm3, %v1009_v53, %v1010_v52  ;;  %v480_v57 = vsel %vm478_vm3, %v1010_v52, %v1009_v53 }
 0x129   : > { %v506_v59 = vpack.c.bf16 %v479_v54, %v479_v54 }
 0x12b   : > { %v555_v62 = vsel %vm515_vm1, %v506_v59, 0 }
 0x12d   : > { %v649_v50 = vpop.permute.xlu0 %648 }
 0x135   : > { %v484_v56 = vpop.permute.xlu1 %483 }
 0x136   : > { %v486_v58 = vsel %vm472_vm4, %v484_v56, %v480_v57 }
 0x137   : > { %v505_v60 = vpack.c.bf16 %v486_v58, %v486_v58 }
 0x139   : > { %v552_v61 = vsel %vm515_vm1, %v505_v60, 0 }
 0x13a   : > { %564 = vmatpush.bf16.msra.mxu0 %v552_v61  ;;  %v531_v21 = vpop.f32.mrf.mxu3 }
 0x13d   : > { %v1014_v4 = vpop.permute.xlu1 %1013  ;;  %906 = vmatmul.msk.bf16.vlgmr.msra.gmra.mxu0 %vm511_vm2, %v504_v63 }
 0x13e   : > { %577 = vmatpush.bf16.msrb.mxu0 %v555_v62  ;;  %v1016_v8 = vunpack.i.h.bf16 %v1014_v4  ;;  %v1015_v11 = vunpack.i.l.bf16 %v1014_v4 }
 0x140   : > { %v496_v13 = vsel %vm494_vm5, %v1016_v8, %v1015_v11  ;;  %v495_v14 = vsel %vm494_vm5, %v1015_v11, %v1016_v8 }
 0x141   : > { %v585_v15 = vpack.c.bf16 %v495_v14, %v495_v14  ;;  %v503_v16 = vsel %vm489_vm6, %v500_v12, %v496_v13  ;;  %v659_v13 = vpop.permute.xlu2 %658 }
 0x142   : > { %v586_v17 = vpack.c.bf16 %v503_v16, %v503_v16  ;;  %v533_v22 = vpop.f32.mrf.mxu3 }
 0x143   : > { %v591_v18 = vsel %vm515_vm1, %v585_v15, 0  ;;  %v664_v22 = vpop.permute.xlu0 %663 }
 0x144   : > { %603 = vmatpush.bf16.msra.mxu2 %v591_v18  ;;  %v594_v19 = vsel %vm515_vm1, %v586_v17, 0 }
 0x145   : > { %616 = vmatpush.bf16.msra.mxu3 %v594_v19  ;;  %v654_v60 = vpop.permute.xlu1 %653 }
 0x147   : > { %909 = vmatmul.msk.bf16.vlgmr.msra.gmra.mxu2 %vm511_vm2, %v908_v20 }
 0x148   : > { %910 = vmatmul.msk.bf16.vlgmr.msra.gmra.mxu3 %vm511_vm2, %v908_v20 }
 0x14a   : > { %v544_v23 = vpop.f32.mrf.mxu3 }
 0x14d   : > { %907 = vmatmul.msk.bf16.vlgmr.msrb.gmra.mxu0 %vm511_vm2, %v504_v63 }
 0x152   : > { %v546_v24 = vpop.f32.mrf.mxu3 }
 0x1ba   : > { %v566_v25 = vpop.f32.mrf.mxu0 }
 0x1bb   : > { %v567_v27 = vadd.f32 %v566_v25, %v531_v21 }
 0x1c2   : > { %v568_v26 = vpop.f32.mrf.mxu0 }
 0x1ca   : > { %v579_v28 = vpop.f32.mrf.mxu0  ;;  %v605_v29 = vpop.f32.mrf.mxu2 }
 0x1cb   : > { %v580_v30 = vadd.f32 %v579_v28, %v544_v23  ;;  %v622_v31 = vadd.f32 %v605_v29, %v567_v27  ;;  %v618_v32 = vpop.f32.mrf.mxu3 }
 0x1cd   : > { %v630_v34 = vadd.f32 %v628_v33, %v622_v31  ;;  %v623_v35 = vadd.f32 %v618_v32, %v580_v30 }
 0x1cf   : > { %v632_v36 = vmul.f32 0.2, %v630_v34  ;;  %v631_v37 = vadd.f32 %v628_v33, %v623_v35 }
 0x1d1   : > { %v634_v38 = vmax.f32 %v630_v34, %v632_v36  ;;  %v633_v39 = vmul.f32 0.2, %v631_v37 }
 0x1d2   : > { %v581_v40 = vpop.f32.mrf.mxu0  ;;  %v607_v41 = vpop.f32.mrf.mxu2 }
 0x1d3   : > { %v640_v42 = vpack.c.bf16 %v634_v38, %v634_v38  ;;  %v620_v43 = vpop.f32.mrf.mxu3  ;;  %v635_v44 = vmax.f32 %v631_v37, %v633_v39 }
 0x1d5   : > { %v683_v45 = vsel %vm515_vm1, %v640_v42, 0  ;;  %v641_v46 = vpack.c.bf16 %v635_v44, %v635_v44 }
 0x1d6   : > { %695 = vmatpush.bf16.msra.mxu0 %v683_v45 }
 0x1d7   : > { %v686_v48 = vsel %vm515_vm1, %v641_v46, 0 }
 0x1d8   : > { %714 = vmatpush.bf16.msrb.mxu1 %v686_v48 }
 0x1d9   : > { %919 = vmatmul.msk.bf16.vlgmr.msra.gmra.mxu0 %vm511_vm2, %v930_v47 }
 0x1db   : > { %921 = vmatmul.msk.bf16.vlgmr.msrb.gmra.mxu1 %vm511_vm2, %v930_v47 }
 0x1e9   : > { %920 = vmatmul.msk.bf16.gmra.mxu0 %vm511_vm2, %v931_v49 }
 0x1eb   : > { %922 = vmatmul.msk.bf16.gmra.mxu1 %vm511_vm2, %v931_v49 }
 0x256   : > { %v697_v51 = vpop.f32.mrf.mxu0 }
 0x257   : > { %v698_v52 = vadd.f32 %v697_v51, %v649_v50 }
 0x258   : > { %v716_v53 = vpop.f32.mrf.mxu1 }
 0x259   : > { %v726_v54 = vadd.f32 %v698_v52, %v1254_v3  ;;  %v717_v55 = vadd.f32 %v716_v53, %v649_v50 }
 0x25b   : > { %v734_v56 = vmul.f32 0.2, %v726_v54  ;;  %v727_v57 = vadd.f32 %v717_v55, %v1269_v9 }
 0x25d   : > { %v742_v58 = vmax.f32 %v726_v54, %v734_v56  ;;  %v735_v59 = vmul.f32 0.2, %v727_v57 }
 0x25e   : > { %v699_v61 = vpop.f32.mrf.mxu0 }
 0x25f   : > { %750 = vst [vmem:[%s1334_s23] sm:$0xff] %v742_v58  ;;  %v743_v62 = vmax.f32 %v727_v57, %v735_v59  ;;  %v700_v63 = vadd.f32 %v699_v61, %v654_v60 }
 0x260   : > { %v718_v0 = vpop.f32.mrf.mxu1 }
 0x261   : > { %751 = vst [vmem:[%s1334_s23 + $0x8] sm:$0xff] %v743_v62  ;;  %v728_v3 = vadd.f32 %v700_v63, %v1261_v5  ;;  %v719_v4 = vadd.f32 %v718_v0, %v654_v60 }
 0x263   : > { %v736_v8 = vmul.f32 0.2, %v728_v3  ;;  %v729_v9 = vadd.f32 %v719_v4, %v1271_v10 }
 0x265   : > { %v744_v11 = vmax.f32 %v728_v3, %v736_v8  ;;  %v737_v12 = vmul.f32 0.2, %v729_v9 }
 0x266   : > { %v702_v14 = vpop.f32.mrf.mxu0 }
 0x267   : > { %752 = vst [vmem:[%s1334_s23 + $0x10] sm:$0xff] %v744_v11  ;;  %v745_v15 = vmax.f32 %v729_v9, %v737_v12  ;;  %v703_v16 = vadd.f32 %v702_v14, %v659_v13 }
 0x268   : > { %v721_v17 = vpop.f32.mrf.mxu1 }
 0x269   : > { %753 = vst [vmem:[%s1334_s23 + $0x18] sm:$0xff] %v745_v15  ;;  %v730_v18 = vadd.f32 %v703_v16, %v1250_v1  ;;  %v722_v19 = vadd.f32 %v721_v17, %v659_v13 }
 0x26b   : > { %v738_v5 = vmul.f32 0.2, %v730_v18  ;;  %v731_v20 = vadd.f32 %v722_v19, %v1263_v6 }
 0x26d   : > { %v746_v10 = vmax.f32 %v730_v18, %v738_v5  ;;  %v739_v21 = vmul.f32 0.2, %v731_v20 }
 0x26e   : > { %v704_v23 = vpop.f32.mrf.mxu0 }
 0x26f   : > { %754 = vst [vmem:[%s1334_s23 + $0x20] sm:$0xff] %v746_v10  ;;  %v747_v24 = vmax.f32 %v731_v20, %v739_v21  ;;  %v705_v25 = vadd.f32 %v704_v23, %v664_v22 }
 0x270   : > { %v723_v26 = vpop.f32.mrf.mxu1 }
 0x271   : > { %755 = vst [vmem:[%s1334_s23 + $0x28] sm:$0xff] %v747_v24  ;;  %v732_v1 = vadd.f32 %v705_v25, %v1252_v2  ;;  %v724_v6 = vadd.f32 %v723_v26, %v664_v22 }
 0x273   : > { %v740_v27 = vmul.f32 0.2, %v732_v1  ;;  %v733_v28 = vadd.f32 %v724_v6, %v1265_v7 }
 0x275   : > { %v748_v29 = vmax.f32 %v732_v1, %v740_v27  ;;  %v741_v30 = vmul.f32 0.2, %v733_v28 }
 0x277   : > { %756 = vst [vmem:[%s1334_s23 + $0x30] sm:$0xff] %v748_v29  ;;  %v749_v31 = vmax.f32 %v733_v28, %v741_v30 }
 0x279   : > { %757 = vst [vmem:[%s1334_s23 + $0x38] sm:$0xff] %v749_v31 }
 0x27a   : > { %1076 = shalt.err (!%p1073_p9)
}
 0x27b   : > { %s1138_s21 = smov 256   ;;  %s1139_s23 = smov 16  }
 0x27c   : > { %937 = dma.vmem_to_hbm [thread:$0]  (%p1225_p4), %s774_s30, 1024, %s776_s12, %s759_s14, %s1138_s21, %s1138_s21, %s1139_s23  }
 0x27d PF: > { %p949_p10 = scmp.ge.s32.totalorder %s1131_s10, 2  ;;  %s790_s11 = sand.u32 1, %s1111_s27  }
 0x27e   : > { %s791_s20 = scalar_lea.sflag [#allocation4], %s790_s11 }
 0x27f   : > { %p944_p11 = pnand %p949_p10, %p1232_p8 }
 0x281   : > { %p945_p12 = pneg %p944_p11 }
 0x283   : > { %1106 = dma.done.wait (%p945_p12), %s791_s20, 1024  }
 0x284   : > { %1108 = vsyncadd (%p945_p12), %s791_s20, 4294966272  ;;  %s22_s10 = sadd.s32 1, %s1131_s10   ;;  %s1400_s27 = smov %s1115_s28 }
 0x285   : > { %p19_p13 = scmp.ge.s32.totalorder %s22_s10, 4   ;;  %s1401_s28 = smov %s1119_s29 }
 0x286   : > { %s1402_s29 = smov %s1238_s18  ;;  %s1403_s30 = smov %s1127_s9 }
 0x287   : > { %s1404_s9 = smov %s1406_s13  ;;  %21 = sbr.rel (!%p19_p13) target bundleno = 5 (0x5), region = 97 }
 0x28c   :  { %797 = vsyncpa [#allocation3], 1 }
 0x28d   :  { %799 = vsyncpa [#allocation3 + $0x1], 1 }
 0x28e   :  { %800 = vsyncpa [#allocation4], 1 }
 0x28f   :  { %802 = vsyncpa [#allocation4 + $0x1], 1 }

</bundles_post_ra>
